<compile_context>
chip_gen: v7x
topology: tpu7x:2x2x1
jax: 0.10.0
libtpu: 0.0.40
codegen_flags: <defaults>
</compile_context>

<pallas_src>
import functools

import jax
import jax.numpy as jnp
from jax import lax
from jax.experimental import pallas as pl
from jax.experimental.pallas import tpu as pltpu

# 3x3 Gaussian blur taps of the synthesized linear_op (compile-time constants).
_GAUSS = ((1.0, 2.0, 1.0),
          (2.0, 4.0, 2.0),
          (1.0, 2.0, 1.0))
_GNORM = 16.0


# ----------------------------------------------------------------------------
# Fused Pallas kernel: one batch element per grid step.
# ----------------------------------------------------------------------------
def _fused_kernel(scale_ref, xk_ref, y_ref,
                  w1_ref, b1_ref, w2_ref, b2_ref, w3_ref, b3_ref,
                  o_ref,
                  fbc_ref, fbf_ref, cols_ref,
                  *, C, F, H, W):
    """All activations are (channels, H*W) f32; H*W sits on the 128-lane axis."""
    HW = H * W
    OFF = W + 1  # interior offset inside the flat padded line buffer of length (H+2)*W+2

    # Horizontal-edge validity masks over the flattened H*W lane axis (0/1 floats).
    col = lax.broadcasted_iota(jnp.int32, (1, HW), 1) % W
    lmask = (col >= 1).astype(jnp.float32)      # source column w-1 is inside the image
    rmask = (col <= W - 2).astype(jnp.float32)  # source column w+1 is inside the image

    def fill(fb_ref, img):
        """Write a (cin, H*W) image into the interior of a flat padded line buffer."""
        fb_ref[:, OFF:OFF + HW] = img

    def tap(fb_ref, dy, dx):
        """Image shifted by (dy, dx), zero padded, as a (cin, H*W) value."""
        s = OFF + dy * W + dx                   # s in [0, 2W+2]; s+HW <= (H+2)*W+2
        t = fb_ref[:, s:s + HW]
        if dx == -1:
            t = t * lmask
        elif dx == 1:
            t = t * rmask
        return t

    def blur(fb_ref):
        """Depthwise 3x3 Gaussian, zero 'same' padding -> (cin, H*W)."""
        acc = None
        for dy in (-1, 0, 1):
            for dx in (-1, 0, 1):
                t = tap(fb_ref, dy, dx) * (_GAUSS[dy + 1][dx + 1] / _GNORM)
                acc = t if acc is None else acc + t
        return acc

    def im2col(fb_ref, row0, cin):
        """Write the 9 shifted taps into cols_ref rows [row0, row0 + 9*cin)."""
        for dy in (-1, 0, 1):
            for dx in (-1, 0, 1):
                ti = (dy + 1) * 3 + (dx + 1)
                r = row0 + ti * cin
                cols_ref[r:r + cin, :] = tap(fb_ref, dy, dx)

    # Zero the padded line buffers so the halo regions read as zero.
    fbc_ref[...] = jnp.zeros_like(fbc_ref)
    fbf_ref[...] = jnp.zeros_like(fbf_ref)

    scale = scale_ref[0]        # 0.1 * sigmoid(eta)
    xk = xk_ref[0]              # (C, H*W)
    yv = y_ref[0]               # (C, H*W)

    # ---- forward_module: dk = xk - scale * (gramian(xk) - adjoint(y)) -------------------
    fill(fbc_ref, xk)
    ax = blur(fbc_ref)          # A xk
    fill(fbc_ref, ax)
    gram = blur(fbc_ref)        # A^T A xk
    fill(fbc_ref, yv)
    aty = blur(fbc_ref)         # A^T y
    dk = xk - scale * (gram - aty)

    # ---- DnCNN layer 1 on concat(y, dk): y taps -> rows [0, 9C), dk taps -> [9C, 18C) ---
    im2col(fbc_ref, 0, C)       # fbc still holds padded y
    fill(fbc_ref, dk)
    im2col(fbc_ref, 9 * C, C)
    h = jnp.dot(w1_ref[...], cols_ref[0:18 * C, :],
                preferred_element_type=jnp.float32)
    h = jnp.maximum(h + b1_ref[...], 0.0)       # (F, H*W)

    # ---- DnCNN layer 2 -------------------------------------------------------------------
    fill(fbf_ref, h)
    im2col(fbf_ref, 0, F)
    h = jnp.dot(w2_ref[...], cols_ref[0:9 * F, :],
                preferred_element_type=jnp.float32)
    h = jnp.maximum(h + b2_ref[...], 0.0)       # (F, H*W)

    # ---- DnCNN layer 3 + fused residual epilogue: out = dk - (W3 @ cols + b3) ------------
    fill(fbf_ref, h)
    im2col(fbf_ref, 0, F)
    res = jnp.dot(w3_ref[...], cols_ref[0:9 * F, :],
                  preferred_element_type=jnp.float32) + b3_ref[...]
    o_ref[0] = (dk - res).astype(o_ref.dtype)


# ----------------------------------------------------------------------------
# Wrapper
# ----------------------------------------------------------------------------
def inverse_block_prox2D_y_forward(params, xk, y, train=False):
    """xk, y: (N, C, H, W) f32 (PyTorch NCHW) -> (N, C, H, W) f32."""
    del train
    N, C, H, W = xk.shape
    F = params["w1"].shape[0]
    HW = H * W
    L = (H + 2) * W + 2                  # flat padded line-buffer length
    K_rows = 9 * max(2 * C, F)           # im2col scratch rows (layer 1 needs 9*2C)
    assert HW % 128 == 0, "H*W must be a multiple of 128 for the lane-dense layout"

    scale = (0.1 * jax.nn.sigmoid(params["eta"])).reshape(1).astype(jnp.float32)

    kernel = functools.partial(_fused_kernel, C=C, F=F, H=H, W=W)
    vmem = pl.BlockSpec(memory_space=pltpu.MemorySpace.VMEM)
    smem = pl.BlockSpec(memory_space=pltpu.MemorySpace.SMEM)

    out = pl.pallas_call(
        kernel,
        out_shape=jax.ShapeDtypeStruct((N, C, HW), jnp.float32),
        grid_spec=pltpu.PrefetchScalarGridSpec(
            num_scalar_prefetch=0,
            grid=(N,),
            in_specs=[
                smem,                                           # scale = 0.1*sigmoid(eta)
                pl.BlockSpec((1, C, HW), lambda n: (n, 0, 0)),  # xk
                pl.BlockSpec((1, C, HW), lambda n: (n, 0, 0)),  # y
                vmem, vmem,                                     # w1, b1
                vmem, vmem,                                     # w2, b2
                vmem, vmem,                                     # w3, b3
            ],
            out_specs=pl.BlockSpec((1, C, HW), lambda n: (n, 0, 0)),
            scratch_shapes=[
                pltpu.VMEM((C, L), jnp.float32),        # flat padded buffer, C channels
                pltpu.VMEM((F, L), jnp.float32),        # flat padded buffer, F channels
                pltpu.VMEM((K_rows, HW), jnp.float32),  # im2col columns
            ],
        ),
        compiler_params=pltpu.CompilerParams(
            dimension_semantics=("parallel",),
            vmem_limit_bytes=32 * 1024 * 1024,
        ),
    )(scale,
      xk.reshape(N, C, HW), y.reshape(N, C, HW),
      params["w1"], params["b1"], params["w2"], params["b2"],
      params["w3"], params["b3"])
    return out.reshape(N, C, H, W)


# ----------------------------------------------------------------------------
# Synthetic parameters (deterministic, built in-script)
# ----------------------------------------------------------------------------
def init_params(key, C, F, eta=1.0):
    k1, k2, k3 = jax.random.split(key, 3)
    return {
        "eta": jnp.ones((1,), jnp.float32) * eta,   # nn.Parameter(torch.ones(1) * args.eta)
        # DnCNN weights stored directly in (Cout, K = 9*Cin) im2col layout;
        # K index = tap*Cin + cin, tap = (dy+1)*3 + (dx+1).
        # Layer 1's K axis is [y taps | dk taps] (concat(y, dk) channel order).
        "w1": 0.1 * jax.random.normal(k1, (F, 9 * 2 * C), jnp.float32),
        "b1": jnp.zeros((F, 1), jnp.float32),
        "w2": 0.1 * jax.random.normal(k2, (F, 9 * F), jnp.float32),
        "b2": jnp.zeros((F, 1), jnp.float32),
        "w3": 0.1 * jax.random.normal(k3, (C, 9 * F), jnp.float32),
        "b3": jnp.zeros((C, 1), jnp.float32),
    }


# ----------------------------------------------------------------------------
# Pure-JAX reference (same synthesized modules) for a correctness check
# ----------------------------------------------------------------------------
def _blur_ref(x):
    H, W = x.shape[-2:]
    xp = jnp.pad(x, ((0, 0), (0, 0), (1, 1), (1, 1)))
    acc = 0.0
    for ky in range(3):
        for kx in range(3):
            acc = acc + (_GAUSS[ky][kx] / _GNORM) * xp[:, :, ky:ky + H, kx:kx + W]
    return acc


def _im2col_ref(x):
    N, Cin, H, W = x.shape
    xp = jnp.pad(x, ((0, 0), (0, 0), (1, 1), (1, 1)))
    taps = [xp[:, :, ky:ky + H, kx:kx + W] for ky in range(3) for kx in range(3)]
    return jnp.concatenate(taps, axis=1)            # (N, 9*Cin, H, W), k = tap*Cin + cin


def _conv_ref(cols, w, b, relu):
    out = jnp.einsum("ok,nkhw->nohw", w, cols, precision=lax.Precision.HIGHEST)
    out = out + b.reshape(1, -1, 1, 1)
    return jnp.maximum(out, 0.0) if relu else out


def reference_forward(params, xk, y):
    scale = 0.1 * jax.nn.sigmoid(params["eta"][0])
    gram = _blur_ref(_blur_ref(xk))
    aty = _blur_ref(y)
    dk = xk - scale * (gram - aty)
    cols1 = jnp.concatenate([_im2col_ref(y), _im2col_ref(dk)], axis=1)
    h = _conv_ref(cols1, params["w1"], params["b1"], relu=True)
    h = _conv_ref(_im2col_ref(h), params["w2"], params["b2"], relu=True)
    res = _conv_ref(_im2col_ref(h), params["w3"], params["b3"], relu=False)
    return dk - res


# ----------------------------------------------------------------------------
# Main
# ----------------------------------------------------------------------------
if __name__ == "__main__":
    N, C, H, W = 2, 4, 16, 16
    F = 16  # DnCNN hidden width

    key = jax.random.PRNGKey(0)
    kx, ky, kp = jax.random.split(key, 3)
    xk_nchw = jax.random.normal(kx, (N, C, H, W), jnp.float32)
    y_nchw = jax.random.normal(ky, (N, C, H, W), jnp.float32)
    params = init_params(kp, C, F, eta=1.0)

    run = jax.jit(lambda a, b: inverse_block_prox2D_y_forward(params, a, b))
    out = run(xk_nchw, y_nchw)
    jax.block_until_ready(out)

    assert out.shape == (N, C, H, W)
    assert out.dtype == jnp.float32
    assert bool(jnp.all(jnp.isfinite(out)))

    ref = reference_forward(params, xk_nchw, y_nchw)
    assert bool(jnp.allclose(out, ref, atol=5e-2, rtol=5e-2))

    print("KERNEL_OK")
</pallas_src>

<mosaic_0001>
module attributes {stable_mosaic.version = 11 : i64} {
  func.func @_fused_kernel(%arg0: i32, %arg1: memref<1xf32, #tpu.memory_space<smem>>, %arg2: memref<1x4x256xf32, #tpu.memory_space<vmem>>, %arg3: memref<1x4x256xf32, #tpu.memory_space<vmem>>, %arg4: memref<16x72xf32, #tpu.memory_space<vmem>>, %arg5: memref<16x1xf32, #tpu.memory_space<vmem>>, %arg6: memref<16x144xf32, #tpu.memory_space<vmem>>, %arg7: memref<16x1xf32, #tpu.memory_space<vmem>>, %arg8: memref<4x144xf32, #tpu.memory_space<vmem>>, %arg9: memref<4x1xf32, #tpu.memory_space<vmem>>, %arg10: memref<1x4x256xf32, #tpu.memory_space<vmem>>, %arg11: memref<4x290xf32, #tpu.memory_space<vmem>>, %arg12: memref<16x290xf32, #tpu.memory_space<vmem>>, %arg13: memref<144x256xf32, #tpu.memory_space<vmem>>) attributes {dimension_semantics = [#tpu.dimension_semantics<parallel>], iteration_bounds = array<i64: 2>, scalar_prefetch = 0 : i64, scratch_operands = 3 : i64, tpu.core_type = #tpu.core_type<tc>, window_params = [{transform_indices = @transform_0, window_bounds = array<i64: 1>}, {transform_indices = @transform_1, window_bounds = array<i64: 1, 4, 256>}, {transform_indices = @transform_2, window_bounds = array<i64: 1, 4, 256>}, {pipeline_mode = #tpu.pipeline_mode<synchronous>, transform_indices = @transform_3, window_bounds = array<i64: 16, 72>}, {pipeline_mode = #tpu.pipeline_mode<synchronous>, transform_indices = @transform_4, window_bounds = array<i64: 16, 1>}, {pipeline_mode = #tpu.pipeline_mode<synchronous>, transform_indices = @transform_5, window_bounds = array<i64: 16, 144>}, {pipeline_mode = #tpu.pipeline_mode<synchronous>, transform_indices = @transform_6, window_bounds = array<i64: 16, 1>}, {pipeline_mode = #tpu.pipeline_mode<synchronous>, transform_indices = @transform_7, window_bounds = array<i64: 4, 144>}, {pipeline_mode = #tpu.pipeline_mode<synchronous>, transform_indices = @transform_8, window_bounds = array<i64: 4, 1>}, {transform_indices = @transform_9, window_bounds = array<i64: 1, 4, 256>}]} {
    %0 = tpu.iota {dimensions = array<i32: 1>} : vector<1x256xi32>
    %c16_i32 = arith.constant 16 : i32
    %c0_i32 = arith.constant 0 : i32
    %1 = arith.cmpi eq, %c16_i32, %c0_i32 : i32
    %c1_i32 = arith.constant 1 : i32
    %2 = arith.select %1, %c1_i32, %c16_i32 : i32
    %3 = vector.broadcast %2 : i32 to vector<1x256xi32>
    %4 = arith.remsi %0, %3 : vector<1x256xi32>
    %c0_i32_0 = arith.constant 0 : i32
    %5 = vector.broadcast %c0_i32_0 : i32 to vector<1x256xi32>
    %6 = arith.cmpi ne, %4, %5 : vector<1x256xi32>
    %c0_i32_1 = arith.constant 0 : i32
    %7 = vector.broadcast %c0_i32_1 : i32 to vector<1x256xi32>
    %8 = arith.cmpi slt, %4, %7 : vector<1x256xi32>
    %c0_i32_2 = arith.constant 0 : i32
    %9 = arith.cmpi slt, %2, %c0_i32_2 : i32
    %10 = vector.broadcast %9 : i1 to vector<1x256xi1>
    %11 = vector.broadcast %10 : vector<1x256xi1> to vector<1x256xi1>
    %12 = arith.xori %8, %11 : vector<1x256xi1>
    %13 = arith.andi %12, %6 : vector<1x256xi1>
    %14 = vector.broadcast %2 : i32 to vector<1x256xi32>
    %15 = arith.addi %4, %14 : vector<1x256xi32>
    %16 = arith.select %13, %15, %4 : vector<1x256xi1>, vector<1x256xi32>
    %c1_i32_3 = arith.constant 1 : i32
    %17 = vector.broadcast %c1_i32_3 : i32 to vector<1x256xi32>
    %18 = arith.cmpi sge, %16, %17 : vector<1x256xi32>
    %19 = arith.extui %18 : vector<1x256xi1> to vector<1x256xi32>
    %20 = arith.sitofp %19 : vector<1x256xi32> to vector<1x256xf32>
    %c14_i32 = arith.constant 14 : i32
    %21 = vector.broadcast %c14_i32 : i32 to vector<1x256xi32>
    %22 = arith.cmpi sle, %16, %21 : vector<1x256xi32>
    %23 = arith.extui %22 : vector<1x256xi1> to vector<1x256xi32>
    %24 = arith.sitofp %23 : vector<1x256xi32> to vector<1x256xf32>
    %cst = arith.constant 0.000000e+00 : f32
    %25 = vector.broadcast %cst : f32 to vector<4x290xf32>
    %c0 = arith.constant 0 : index
    %c0_4 = arith.constant 0 : index
    %26 = vector.load %arg11[%c0, %c0_4] : memref<4x290xf32, #tpu.memory_space<vmem>>, vector<4x290xf32>
    tpu.vector_store %arg11[%c0, %c0_4], %25 {strides = array<i32>} : memref<4x290xf32, #tpu.memory_space<vmem>>, vector<4x290xf32>,
    %cst_5 = arith.constant 0.000000e+00 : f32
    %27 = vector.broadcast %cst_5 : f32 to vector<16x290xf32>
    %c0_6 = arith.constant 0 : index
    %c0_7 = arith.constant 0 : index
    %28 = vector.load %arg12[%c0_6, %c0_7] : memref<16x290xf32, #tpu.memory_space<vmem>>, vector<16x290xf32>
    tpu.vector_store %arg12[%c0_6, %c0_7], %27 {strides = array<i32>} : memref<16x290xf32, #tpu.memory_space<vmem>>, vector<16x290xf32>,
    %c0_8 = arith.constant 0 : index
    %29 = memref.load %arg1[%c0_8] : memref<1xf32, #tpu.memory_space<smem>>
    %c0_9 = arith.constant 0 : index
    %c0_10 = arith.constant 0 : index
    %c0_11 = arith.constant 0 : index
    %30 = vector.load %arg2[%c0_9, %c0_10, %c0_11] : memref<1x4x256xf32, #tpu.memory_space<vmem>>, vector<1x4x256xf32>
    %31 = vector.shape_cast %30 : vector<1x4x256xf32> to vector<4x256xf32>
    %c0_12 = arith.constant 0 : index
    %c0_13 = arith.constant 0 : index
    %c0_14 = arith.constant 0 : index
    %32 = vector.load %arg3[%c0_12, %c0_13, %c0_14] : memref<1x4x256xf32, #tpu.memory_space<vmem>>, vector<1x4x256xf32>
    %33 = vector.shape_cast %32 : vector<1x4x256xf32> to vector<4x256xf32>
    %c0_15 = arith.constant 0 : index
    %c17 = arith.constant 17 : index
    %34 = vector.load %arg11[%c0_15, %c17] : memref<4x290xf32, #tpu.memory_space<vmem>>, vector<4x256xf32>
    tpu.vector_store %arg11[%c0_15, %c17], %31 {strides = array<i32>} : memref<4x290xf32, #tpu.memory_space<vmem>>, vector<4x256xf32>,
    %c0_16 = arith.constant 0 : index
    %c0_17 = arith.constant 0 : index
    %35 = vector.load %arg11[%c0_16, %c0_17] : memref<4x290xf32, #tpu.memory_space<vmem>>, vector<4x256xf32>
    %36 = vector.broadcast %20 : vector<1x256xf32> to vector<4x256xf32>
    %37 = arith.mulf %35, %36 : vector<4x256xf32>
    %cst_18 = arith.constant 6.250000e-02 : f32
    %38 = vector.broadcast %cst_18 : f32 to vector<4x256xf32>
    %39 = arith.mulf %37, %38 : vector<4x256xf32>
    %c0_19 = arith.constant 0 : index
    %c1 = arith.constant 1 : index
    %40 = vector.load %arg11[%c0_19, %c1] : memref<4x290xf32, #tpu.memory_space<vmem>>, vector<4x256xf32>
    %cst_20 = arith.constant 1.250000e-01 : f32
    %41 = vector.broadcast %cst_20 : f32 to vector<4x256xf32>
    %42 = arith.mulf %40, %41 : vector<4x256xf32>
    %43 = arith.addf %39, %42 : vector<4x256xf32>
    %c0_21 = arith.constant 0 : index
    %c2 = arith.constant 2 : index
    %44 = vector.load %arg11[%c0_21, %c2] : memref<4x290xf32, #tpu.memory_space<vmem>>, vector<4x256xf32>
    %45 = vector.broadcast %24 : vector<1x256xf32> to vector<4x256xf32>
    %46 = arith.mulf %44, %45 : vector<4x256xf32>
    %cst_22 = arith.constant 6.250000e-02 : f32
    %47 = vector.broadcast %cst_22 : f32 to vector<4x256xf32>
    %48 = arith.mulf %46, %47 : vector<4x256xf32>
    %49 = arith.addf %43, %48 : vector<4x256xf32>
    %c0_23 = arith.constant 0 : index
    %c16 = arith.constant 16 : index
    %50 = vector.load %arg11[%c0_23, %c16] : memref<4x290xf32, #tpu.memory_space<vmem>>, vector<4x256xf32>
    %51 = vector.broadcast %20 : vector<1x256xf32> to vector<4x256xf32>
    %52 = arith.mulf %50, %51 : vector<4x256xf32>
    %cst_24 = arith.constant 1.250000e-01 : f32
    %53 = vector.broadcast %cst_24 : f32 to vector<4x256xf32>
    %54 = arith.mulf %52, %53 : vector<4x256xf32>
    %55 = arith.addf %49, %54 : vector<4x256xf32>
    %c0_25 = arith.constant 0 : index
    %c17_26 = arith.constant 17 : index
    %56 = vector.load %arg11[%c0_25, %c17_26] : memref<4x290xf32, #tpu.memory_space<vmem>>, vector<4x256xf32>
    %cst_27 = arith.constant 2.500000e-01 : f32
    %57 = vector.broadcast %cst_27 : f32 to vector<4x256xf32>
    %58 = arith.mulf %56, %57 : vector<4x256xf32>
    %59 = arith.addf %55, %58 : vector<4x256xf32>
    %c0_28 = arith.constant 0 : index
    %c18 = arith.constant 18 : index
    %60 = vector.load %arg11[%c0_28, %c18] : memref<4x290xf32, #tpu.memory_space<vmem>>, vector<4x256xf32>
    %61 = vector.broadcast %24 : vector<1x256xf32> to vector<4x256xf32>
    %62 = arith.mulf %60, %61 : vector<4x256xf32>
    %cst_29 = arith.constant 1.250000e-01 : f32
    %63 = vector.broadcast %cst_29 : f32 to vector<4x256xf32>
    %64 = arith.mulf %62, %63 : vector<4x256xf32>
    %65 = arith.addf %59, %64 : vector<4x256xf32>
    %c0_30 = arith.constant 0 : index
    %c32 = arith.constant 32 : index
    %66 = vector.load %arg11[%c0_30, %c32] : memref<4x290xf32, #tpu.memory_space<vmem>>, vector<4x256xf32>
    %67 = vector.broadcast %20 : vector<1x256xf32> to vector<4x256xf32>
    %68 = arith.mulf %66, %67 : vector<4x256xf32>
    %cst_31 = arith.constant 6.250000e-02 : f32
    %69 = vector.broadcast %cst_31 : f32 to vector<4x256xf32>
    %70 = arith.mulf %68, %69 : vector<4x256xf32>
    %71 = arith.addf %65, %70 : vector<4x256xf32>
    %c0_32 = arith.constant 0 : index
    %c33 = arith.constant 33 : index
    %72 = vector.load %arg11[%c0_32, %c33] : memref<4x290xf32, #tpu.memory_space<vmem>>, vector<4x256xf32>
    %cst_33 = arith.constant 1.250000e-01 : f32
    %73 = vector.broadcast %cst_33 : f32 to vector<4x256xf32>
    %74 = arith.mulf %72, %73 : vector<4x256xf32>
    %75 = arith.addf %71, %74 : vector<4x256xf32>
    %c0_34 = arith.constant 0 : index
    %c34 = arith.constant 34 : index
    %76 = vector.load %arg11[%c0_34, %c34] : memref<4x290xf32, #tpu.memory_space<vmem>>, vector<4x256xf32>
    %77 = vector.broadcast %24 : vector<1x256xf32> to vector<4x256xf32>
    %78 = arith.mulf %76, %77 : vector<4x256xf32>
    %cst_35 = arith.constant 6.250000e-02 : f32
    %79 = vector.broadcast %cst_35 : f32 to vector<4x256xf32>
    %80 = arith.mulf %78, %79 : vector<4x256xf32>
    %81 = arith.addf %75, %80 : vector<4x256xf32>
    %c0_36 = arith.constant 0 : index
    %c17_37 = arith.constant 17 : index
    %82 = vector.load %arg11[%c0_36, %c17_37] : memref<4x290xf32, #tpu.memory_space<vmem>>, vector<4x256xf32>
    tpu.vector_store %arg11[%c0_36, %c17_37], %81 {strides = array<i32>} : memref<4x290xf32, #tpu.memory_space<vmem>>, vector<4x256xf32>,
    %c0_38 = arith.constant 0 : index
    %c0_39 = arith.constant 0 : index
    %83 = vector.load %arg11[%c0_38, %c0_39] : memref<4x290xf32, #tpu.memory_space<vmem>>, vector<4x256xf32>
    %84 = vector.broadcast %20 : vector<1x256xf32> to vector<4x256xf32>
    %85 = arith.mulf %83, %84 : vector<4x256xf32>
    %cst_40 = arith.constant 6.250000e-02 : f32
    %86 = vector.broadcast %cst_40 : f32 to vector<4x256xf32>
    %87 = arith.mulf %85, %86 : vector<4x256xf32>
    %c0_41 = arith.constant 0 : index
    %c1_42 = arith.constant 1 : index
    %88 = vector.load %arg11[%c0_41, %c1_42] : memref<4x290xf32, #tpu.memory_space<vmem>>, vector<4x256xf32>
    %cst_43 = arith.constant 1.250000e-01 : f32
    %89 = vector.broadcast %cst_43 : f32 to vector<4x256xf32>
    %90 = arith.mulf %88, %89 : vector<4x256xf32>
    %91 = arith.addf %87, %90 : vector<4x256xf32>
    %c0_44 = arith.constant 0 : index
    %c2_45 = arith.constant 2 : index
    %92 = vector.load %arg11[%c0_44, %c2_45] : memref<4x290xf32, #tpu.memory_space<vmem>>, vector<4x256xf32>
    %93 = vector.broadcast %24 : vector<1x256xf32> to vector<4x256xf32>
    %94 = arith.mulf %92, %93 : vector<4x256xf32>
    %cst_46 = arith.constant 6.250000e-02 : f32
    %95 = vector.broadcast %cst_46 : f32 to vector<4x256xf32>
    %96 = arith.mulf %94, %95 : vector<4x256xf32>
    %97 = arith.addf %91, %96 : vector<4x256xf32>
    %c0_47 = arith.constant 0 : index
    %c16_48 = arith.constant 16 : index
    %98 = vector.load %arg11[%c0_47, %c16_48] : memref<4x290xf32, #tpu.memory_space<vmem>>, vector<4x256xf32>
    %99 = vector.broadcast %20 : vector<1x256xf32> to vector<4x256xf32>
    %100 = arith.mulf %98, %99 : vector<4x256xf32>
    %cst_49 = arith.constant 1.250000e-01 : f32
    %101 = vector.broadcast %cst_49 : f32 to vector<4x256xf32>
    %102 = arith.mulf %100, %101 : vector<4x256xf32>
    %103 = arith.addf %97, %102 : vector<4x256xf32>
    %c0_50 = arith.constant 0 : index
    %c17_51 = arith.constant 17 : index
    %104 = vector.load %arg11[%c0_50, %c17_51] : memref<4x290xf32, #tpu.memory_space<vmem>>, vector<4x256xf32>
    %cst_52 = arith.constant 2.500000e-01 : f32
    %105 = vector.broadcast %cst_52 : f32 to vector<4x256xf32>
    %106 = arith.mulf %104, %105 : vector<4x256xf32>
    %107 = arith.addf %103, %106 : vector<4x256xf32>
    %c0_53 = arith.constant 0 : index
    %c18_54 = arith.constant 18 : index
    %108 = vector.load %arg11[%c0_53, %c18_54] : memref<4x290xf32, #tpu.memory_space<vmem>>, vector<4x256xf32>
    %109 = vector.broadcast %24 : vector<1x256xf32> to vector<4x256xf32>
    %110 = arith.mulf %108, %109 : vector<4x256xf32>
    %cst_55 = arith.constant 1.250000e-01 : f32
    %111 = vector.broadcast %cst_55 : f32 to vector<4x256xf32>
    %112 = arith.mulf %110, %111 : vector<4x256xf32>
    %113 = arith.addf %107, %112 : vector<4x256xf32>
    %c0_56 = arith.constant 0 : index
    %c32_57 = arith.constant 32 : index
    %114 = vector.load %arg11[%c0_56, %c32_57] : memref<4x290xf32, #tpu.memory_space<vmem>>, vector<4x256xf32>
    %115 = vector.broadcast %20 : vector<1x256xf32> to vector<4x256xf32>
    %116 = arith.mulf %114, %115 : vector<4x256xf32>
    %cst_58 = arith.constant 6.250000e-02 : f32
    %117 = vector.broadcast %cst_58 : f32 to vector<4x256xf32>
    %118 = arith.mulf %116, %117 : vector<4x256xf32>
    %119 = arith.addf %113, %118 : vector<4x256xf32>
    %c0_59 = arith.constant 0 : index
    %c33_60 = arith.constant 33 : index
    %120 = vector.load %arg11[%c0_59, %c33_60] : memref<4x290xf32, #tpu.memory_space<vmem>>, vector<4x256xf32>
    %cst_61 = arith.constant 1.250000e-01 : f32
    %121 = vector.broadcast %cst_61 : f32 to vector<4x256xf32>
    %122 = arith.mulf %120, %121 : vector<4x256xf32>
    %123 = arith.addf %119, %122 : vector<4x256xf32>
    %c0_62 = arith.constant 0 : index
    %c34_63 = arith.constant 34 : index
    %124 = vector.load %arg11[%c0_62, %c34_63] : memref<4x290xf32, #tpu.memory_space<vmem>>, vector<4x256xf32>
    %125 = vector.broadcast %24 : vector<1x256xf32> to vector<4x256xf32>
    %126 = arith.mulf %124, %125 : vector<4x256xf32>
    %cst_64 = arith.constant 6.250000e-02 : f32
    %127 = vector.broadcast %cst_64 : f32 to vector<4x256xf32>
    %128 = arith.mulf %126, %127 : vector<4x256xf32>
    %129 = arith.addf %123, %128 : vector<4x256xf32>
    %c0_65 = arith.constant 0 : index
    %c17_66 = arith.constant 17 : index
    %130 = vector.load %arg11[%c0_65, %c17_66] : memref<4x290xf32, #tpu.memory_space<vmem>>, vector<4x256xf32>
    tpu.vector_store %arg11[%c0_65, %c17_66], %33 {strides = array<i32>} : memref<4x290xf32, #tpu.memory_space<vmem>>, vector<4x256xf32>,
    %c0_67 = arith.constant 0 : index
    %c0_68 = arith.constant 0 : index
    %131 = vector.load %arg11[%c0_67, %c0_68] : memref<4x290xf32, #tpu.memory_space<vmem>>, vector<4x256xf32>
    %132 = vector.broadcast %20 : vector<1x256xf32> to vector<4x256xf32>
    %133 = arith.mulf %131, %132 : vector<4x256xf32>
    %cst_69 = arith.constant 6.250000e-02 : f32
    %134 = vector.broadcast %cst_69 : f32 to vector<4x256xf32>
    %135 = arith.mulf %133, %134 : vector<4x256xf32>
    %c0_70 = arith.constant 0 : index
    %c1_71 = arith.constant 1 : index
    %136 = vector.load %arg11[%c0_70, %c1_71] : memref<4x290xf32, #tpu.memory_space<vmem>>, vector<4x256xf32>
    %cst_72 = arith.constant 1.250000e-01 : f32
    %137 = vector.broadcast %cst_72 : f32 to vector<4x256xf32>
    %138 = arith.mulf %136, %137 : vector<4x256xf32>
    %139 = arith.addf %135, %138 : vector<4x256xf32>
    %c0_73 = arith.constant 0 : index
    %c2_74 = arith.constant 2 : index
    %140 = vector.load %arg11[%c0_73, %c2_74] : memref<4x290xf32, #tpu.memory_space<vmem>>, vector<4x256xf32>
    %141 = vector.broadcast %24 : vector<1x256xf32> to vector<4x256xf32>
    %142 = arith.mulf %140, %141 : vector<4x256xf32>
    %cst_75 = arith.constant 6.250000e-02 : f32
    %143 = vector.broadcast %cst_75 : f32 to vector<4x256xf32>
    %144 = arith.mulf %142, %143 : vector<4x256xf32>
    %145 = arith.addf %139, %144 : vector<4x256xf32>
    %c0_76 = arith.constant 0 : index
    %c16_77 = arith.constant 16 : index
    %146 = vector.load %arg11[%c0_76, %c16_77] : memref<4x290xf32, #tpu.memory_space<vmem>>, vector<4x256xf32>
    %147 = vector.broadcast %20 : vector<1x256xf32> to vector<4x256xf32>
    %148 = arith.mulf %146, %147 : vector<4x256xf32>
    %cst_78 = arith.constant 1.250000e-01 : f32
    %149 = vector.broadcast %cst_78 : f32 to vector<4x256xf32>
    %150 = arith.mulf %148, %149 : vector<4x256xf32>
    %151 = arith.addf %145, %150 : vector<4x256xf32>
    %c0_79 = arith.constant 0 : index
    %c17_80 = arith.constant 17 : index
    %152 = vector.load %arg11[%c0_79, %c17_80] : memref<4x290xf32, #tpu.memory_space<vmem>>, vector<4x256xf32>
    %cst_81 = arith.constant 2.500000e-01 : f32
    %153 = vector.broadcast %cst_81 : f32 to vector<4x256xf32>
    %154 = arith.mulf %152, %153 : vector<4x256xf32>
    %155 = arith.addf %151, %154 : vector<4x256xf32>
    %c0_82 = arith.constant 0 : index
    %c18_83 = arith.constant 18 : index
    %156 = vector.load %arg11[%c0_82, %c18_83] : memref<4x290xf32, #tpu.memory_space<vmem>>, vector<4x256xf32>
    %157 = vector.broadcast %24 : vector<1x256xf32> to vector<4x256xf32>
    %158 = arith.mulf %156, %157 : vector<4x256xf32>
    %cst_84 = arith.constant 1.250000e-01 : f32
    %159 = vector.broadcast %cst_84 : f32 to vector<4x256xf32>
    %160 = arith.mulf %158, %159 : vector<4x256xf32>
    %161 = arith.addf %155, %160 : vector<4x256xf32>
    %c0_85 = arith.constant 0 : index
    %c32_86 = arith.constant 32 : index
    %162 = vector.load %arg11[%c0_85, %c32_86] : memref<4x290xf32, #tpu.memory_space<vmem>>, vector<4x256xf32>
    %163 = vector.broadcast %20 : vector<1x256xf32> to vector<4x256xf32>
    %164 = arith.mulf %162, %163 : vector<4x256xf32>
    %cst_87 = arith.constant 6.250000e-02 : f32
    %165 = vector.broadcast %cst_87 : f32 to vector<4x256xf32>
    %166 = arith.mulf %164, %165 : vector<4x256xf32>
    %167 = arith.addf %161, %166 : vector<4x256xf32>
    %c0_88 = arith.constant 0 : index
    %c33_89 = arith.constant 33 : index
    %168 = vector.load %arg11[%c0_88, %c33_89] : memref<4x290xf32, #tpu.memory_space<vmem>>, vector<4x256xf32>
    %cst_90 = arith.constant 1.250000e-01 : f32
    %169 = vector.broadcast %cst_90 : f32 to vector<4x256xf32>
    %170 = arith.mulf %168, %169 : vector<4x256xf32>
    %171 = arith.addf %167, %170 : vector<4x256xf32>
    %c0_91 = arith.constant 0 : index
    %c34_92 = arith.constant 34 : index
    %172 = vector.load %arg11[%c0_91, %c34_92] : memref<4x290xf32, #tpu.memory_space<vmem>>, vector<4x256xf32>
    %173 = vector.broadcast %24 : vector<1x256xf32> to vector<4x256xf32>
    %174 = arith.mulf %172, %173 : vector<4x256xf32>
    %cst_93 = arith.constant 6.250000e-02 : f32
    %175 = vector.broadcast %cst_93 : f32 to vector<4x256xf32>
    %176 = arith.mulf %174, %175 : vector<4x256xf32>
    %177 = arith.addf %171, %176 : vector<4x256xf32>
    %178 = arith.subf %129, %177 : vector<4x256xf32>
    %179 = vector.broadcast %29 : f32 to vector<4x256xf32>
    %180 = arith.mulf %179, %178 : vector<4x256xf32>
    %181 = arith.subf %31, %180 : vector<4x256xf32>
    %c0_94 = arith.constant 0 : index
    %c0_95 = arith.constant 0 : index
    %182 = vector.load %arg11[%c0_94, %c0_95] : memref<4x290xf32, #tpu.memory_space<vmem>>, vector<4x256xf32>
    %183 = vector.broadcast %20 : vector<1x256xf32> to vector<4x256xf32>
    %184 = arith.mulf %182, %183 : vector<4x256xf32>
    %c0_96 = arith.constant 0 : index
    %c0_97 = arith.constant 0 : index
    %185 = vector.load %arg13[%c0_96, %c0_97] : memref<144x256xf32, #tpu.memory_space<vmem>>, vector<4x256xf32>
    tpu.vector_store %arg13[%c0_96, %c0_97], %184 {strides = array<i32>} : memref<144x256xf32, #tpu.memory_space<vmem>>, vector<4x256xf32>,
    %c0_98 = arith.constant 0 : index
    %c1_99 = arith.constant 1 : index
    %186 = vector.load %arg11[%c0_98, %c1_99] : memref<4x290xf32, #tpu.memory_space<vmem>>, vector<4x256xf32>
    %c4 = arith.constant 4 : index
    %c0_100 = arith.constant 0 : index
    %187 = vector.load %arg13[%c4, %c0_100] : memref<144x256xf32, #tpu.memory_space<vmem>>, vector<4x256xf32>
    tpu.vector_store %arg13[%c4, %c0_100], %186 {strides = array<i32>} : memref<144x256xf32, #tpu.memory_space<vmem>>, vector<4x256xf32>,
    %c0_101 = arith.constant 0 : index
    %c2_102 = arith.constant 2 : index
    %188 = vector.load %arg11[%c0_101, %c2_102] : memref<4x290xf32, #tpu.memory_space<vmem>>, vector<4x256xf32>
    %189 = vector.broadcast %24 : vector<1x256xf32> to vector<4x256xf32>
    %190 = arith.mulf %188, %189 : vector<4x256xf32>
    %c8 = arith.constant 8 : index
    %c0_103 = arith.constant 0 : index
    %191 = vector.load %arg13[%c8, %c0_103] : memref<144x256xf32, #tpu.memory_space<vmem>>, vector<4x256xf32>
    tpu.vector_store %arg13[%c8, %c0_103], %190 {strides = array<i32>} : memref<144x256xf32, #tpu.memory_space<vmem>>, vector<4x256xf32>,
    %c0_104 = arith.constant 0 : index
    %c16_105 = arith.constant 16 : index
    %192 = vector.load %arg11[%c0_104, %c16_105] : memref<4x290xf32, #tpu.memory_space<vmem>>, vector<4x256xf32>
    %193 = vector.broadcast %20 : vector<1x256xf32> to vector<4x256xf32>
    %194 = arith.mulf %192, %193 : vector<4x256xf32>
    %c12 = arith.constant 12 : index
    %c0_106 = arith.constant 0 : index
    %195 = vector.load %arg13[%c12, %c0_106] : memref<144x256xf32, #tpu.memory_space<vmem>>, vector<4x256xf32>
    tpu.vector_store %arg13[%c12, %c0_106], %194 {strides = array<i32>} : memref<144x256xf32, #tpu.memory_space<vmem>>, vector<4x256xf32>,
    %c0_107 = arith.constant 0 : index
    %c17_108 = arith.constant 17 : index
    %196 = vector.load %arg11[%c0_107, %c17_108] : memref<4x290xf32, #tpu.memory_space<vmem>>, vector<4x256xf32>
    %c16_109 = arith.constant 16 : index
    %c0_110 = arith.constant 0 : index
    %197 = vector.load %arg13[%c16_109, %c0_110] : memref<144x256xf32, #tpu.memory_space<vmem>>, vector<4x256xf32>
    tpu.vector_store %arg13[%c16_109, %c0_110], %196 {strides = array<i32>} : memref<144x256xf32, #tpu.memory_space<vmem>>, vector<4x256xf32>,
    %c0_111 = arith.constant 0 : index
    %c18_112 = arith.constant 18 : index
    %198 = vector.load %arg11[%c0_111, %c18_112] : memref<4x290xf32, #tpu.memory_space<vmem>>, vector<4x256xf32>
    %199 = vector.broadcast %24 : vector<1x256xf32> to vector<4x256xf32>
    %200 = arith.mulf %198, %199 : vector<4x256xf32>
    %c20 = arith.constant 20 : index
    %c0_113 = arith.constant 0 : index
    %201 = vector.load %arg13[%c20, %c0_113] : memref<144x256xf32, #tpu.memory_space<vmem>>, vector<4x256xf32>
    tpu.vector_store %arg13[%c20, %c0_113], %200 {strides = array<i32>} : memref<144x256xf32, #tpu.memory_space<vmem>>, vector<4x256xf32>,
    %c0_114 = arith.constant 0 : index
    %c32_115 = arith.constant 32 : index
    %202 = vector.load %arg11[%c0_114, %c32_115] : memref<4x290xf32, #tpu.memory_space<vmem>>, vector<4x256xf32>
    %203 = vector.broadcast %20 : vector<1x256xf32> to vector<4x256xf32>
    %204 = arith.mulf %202, %203 : vector<4x256xf32>
    %c24 = arith.constant 24 : index
    %c0_116 = arith.constant 0 : index
    %205 = vector.load %arg13[%c24, %c0_116] : memref<144x256xf32, #tpu.memory_space<vmem>>, vector<4x256xf32>
    tpu.vector_store %arg13[%c24, %c0_116], %204 {strides = array<i32>} : memref<144x256xf32, #tpu.memory_space<vmem>>, vector<4x256xf32>,
    %c0_117 = arith.constant 0 : index
    %c33_118 = arith.constant 33 : index
    %206 = vector.load %arg11[%c0_117, %c33_118] : memref<4x290xf32, #tpu.memory_space<vmem>>, vector<4x256xf32>
    %c28 = arith.constant 28 : index
    %c0_119 = arith.constant 0 : index
    %207 = vector.load %arg13[%c28, %c0_119] : memref<144x256xf32, #tpu.memory_space<vmem>>, vector<4x256xf32>
    tpu.vector_store %arg13[%c28, %c0_119], %206 {strides = array<i32>} : memref<144x256xf32, #tpu.memory_space<vmem>>, vector<4x256xf32>,
    %c0_120 = arith.constant 0 : index
    %c34_121 = arith.constant 34 : index
    %208 = vector.load %arg11[%c0_120, %c34_121] : memref<4x290xf32, #tpu.memory_space<vmem>>, vector<4x256xf32>
    %209 = vector.broadcast %24 : vector<1x256xf32> to vector<4x256xf32>
    %210 = arith.mulf %208, %209 : vector<4x256xf32>
    %c32_122 = arith.constant 32 : index
    %c0_123 = arith.constant 0 : index
    %211 = vector.load %arg13[%c32_122, %c0_123] : memref<144x256xf32, #tpu.memory_space<vmem>>, vector<4x256xf32>
    tpu.vector_store %arg13[%c32_122, %c0_123], %210 {strides = array<i32>} : memref<144x256xf32, #tpu.memory_space<vmem>>, vector<4x256xf32>,
    %c0_124 = arith.constant 0 : index
    %c17_125 = arith.constant 17 : index
    %212 = vector.load %arg11[%c0_124, %c17_125] : memref<4x290xf32, #tpu.memory_space<vmem>>, vector<4x256xf32>
    tpu.vector_store %arg11[%c0_124, %c17_125], %181 {strides = array<i32>} : memref<4x290xf32, #tpu.memory_space<vmem>>, vector<4x256xf32>,
    %c0_126 = arith.constant 0 : index
    %c0_127 = arith.constant 0 : index
    %213 = vector.load %arg11[%c0_126, %c0_127] : memref<4x290xf32, #tpu.memory_space<vmem>>, vector<4x256xf32>
    %214 = vector.broadcast %20 : vector<1x256xf32> to vector<4x256xf32>
    %215 = arith.mulf %213, %214 : vector<4x256xf32>
    %c36 = arith.constant 36 : index
    %c0_128 = arith.constant 0 : index
    %216 = vector.load %arg13[%c36, %c0_128] : memref<144x256xf32, #tpu.memory_space<vmem>>, vector<4x256xf32>
    tpu.vector_store %arg13[%c36, %c0_128], %215 {strides = array<i32>} : memref<144x256xf32, #tpu.memory_space<vmem>>, vector<4x256xf32>,
    %c0_129 = arith.constant 0 : index
    %c1_130 = arith.constant 1 : index
    %217 = vector.load %arg11[%c0_129, %c1_130] : memref<4x290xf32, #tpu.memory_space<vmem>>, vector<4x256xf32>
    %c40 = arith.constant 40 : index
    %c0_131 = arith.constant 0 : index
    %218 = vector.load %arg13[%c40, %c0_131] : memref<144x256xf32, #tpu.memory_space<vmem>>, vector<4x256xf32>
    tpu.vector_store %arg13[%c40, %c0_131], %217 {strides = array<i32>} : memref<144x256xf32, #tpu.memory_space<vmem>>, vector<4x256xf32>,
    %c0_132 = arith.constant 0 : index
    %c2_133 = arith.constant 2 : index
    %219 = vector.load %arg11[%c0_132, %c2_133] : memref<4x290xf32, #tpu.memory_space<vmem>>, vector<4x256xf32>
    %220 = vector.broadcast %24 : vector<1x256xf32> to vector<4x256xf32>
    %221 = arith.mulf %219, %220 : vector<4x256xf32>
    %c44 = arith.constant 44 : index
    %c0_134 = arith.constant 0 : index
    %222 = vector.load %arg13[%c44, %c0_134] : memref<144x256xf32, #tpu.memory_space<vmem>>, vector<4x256xf32>
    tpu.vector_store %arg13[%c44, %c0_134], %221 {strides = array<i32>} : memref<144x256xf32, #tpu.memory_space<vmem>>, vector<4x256xf32>,
    %c0_135 = arith.constant 0 : index
    %c16_136 = arith.constant 16 : index
    %223 = vector.load %arg11[%c0_135, %c16_136] : memref<4x290xf32, #tpu.memory_space<vmem>>, vector<4x256xf32>
    %224 = vector.broadcast %20 : vector<1x256xf32> to vector<4x256xf32>
    %225 = arith.mulf %223, %224 : vector<4x256xf32>
    %c48 = arith.constant 48 : index
    %c0_137 = arith.constant 0 : index
    %226 = vector.load %arg13[%c48, %c0_137] : memref<144x256xf32, #tpu.memory_space<vmem>>, vector<4x256xf32>
    tpu.vector_store %arg13[%c48, %c0_137], %225 {strides = array<i32>} : memref<144x256xf32, #tpu.memory_space<vmem>>, vector<4x256xf32>,
    %c0_138 = arith.constant 0 : index
    %c17_139 = arith.constant 17 : index
    %227 = vector.load %arg11[%c0_138, %c17_139] : memref<4x290xf32, #tpu.memory_space<vmem>>, vector<4x256xf32>
    %c52 = arith.constant 52 : index
    %c0_140 = arith.constant 0 : index
    %228 = vector.load %arg13[%c52, %c0_140] : memref<144x256xf32, #tpu.memory_space<vmem>>, vector<4x256xf32>
    tpu.vector_store %arg13[%c52, %c0_140], %227 {strides = array<i32>} : memref<144x256xf32, #tpu.memory_space<vmem>>, vector<4x256xf32>,
    %c0_141 = arith.constant 0 : index
    %c18_142 = arith.constant 18 : index
    %229 = vector.load %arg11[%c0_141, %c18_142] : memref<4x290xf32, #tpu.memory_space<vmem>>, vector<4x256xf32>
    %230 = vector.broadcast %24 : vector<1x256xf32> to vector<4x256xf32>
    %231 = arith.mulf %229, %230 : vector<4x256xf32>
    %c56 = arith.constant 56 : index
    %c0_143 = arith.constant 0 : index
    %232 = vector.load %arg13[%c56, %c0_143] : memref<144x256xf32, #tpu.memory_space<vmem>>, vector<4x256xf32>
    tpu.vector_store %arg13[%c56, %c0_143], %231 {strides = array<i32>} : memref<144x256xf32, #tpu.memory_space<vmem>>, vector<4x256xf32>,
    %c0_144 = arith.constant 0 : index
    %c32_145 = arith.constant 32 : index
    %233 = vector.load %arg11[%c0_144, %c32_145] : memref<4x290xf32, #tpu.memory_space<vmem>>, vector<4x256xf32>
    %234 = vector.broadcast %20 : vector<1x256xf32> to vector<4x256xf32>
    %235 = arith.mulf %233, %234 : vector<4x256xf32>
    %c60 = arith.constant 60 : index
    %c0_146 = arith.constant 0 : index
    %236 = vector.load %arg13[%c60, %c0_146] : memref<144x256xf32, #tpu.memory_space<vmem>>, vector<4x256xf32>
    tpu.vector_store %arg13[%c60, %c0_146], %235 {strides = array<i32>} : memref<144x256xf32, #tpu.memory_space<vmem>>, vector<4x256xf32>,
    %c0_147 = arith.constant 0 : index
    %c33_148 = arith.constant 33 : index
    %237 = vector.load %arg11[%c0_147, %c33_148] : memref<4x290xf32, #tpu.memory_space<vmem>>, vector<4x256xf32>
    %c64 = arith.constant 64 : index
    %c0_149 = arith.constant 0 : index
    %238 = vector.load %arg13[%c64, %c0_149] : memref<144x256xf32, #tpu.memory_space<vmem>>, vector<4x256xf32>
    tpu.vector_store %arg13[%c64, %c0_149], %237 {strides = array<i32>} : memref<144x256xf32, #tpu.memory_space<vmem>>, vector<4x256xf32>,
    %c0_150 = arith.constant 0 : index
    %c34_151 = arith.constant 34 : index
    %239 = vector.load %arg11[%c0_150, %c34_151] : memref<4x290xf32, #tpu.memory_space<vmem>>, vector<4x256xf32>
    %240 = vector.broadcast %24 : vector<1x256xf32> to vector<4x256xf32>
    %241 = arith.mulf %239, %240 : vector<4x256xf32>
    %c68 = arith.constant 68 : index
    %c0_152 = arith.constant 0 : index
    %242 = vector.load %arg13[%c68, %c0_152] : memref<144x256xf32, #tpu.memory_space<vmem>>, vector<4x256xf32>
    tpu.vector_store %arg13[%c68, %c0_152], %241 {strides = array<i32>} : memref<144x256xf32, #tpu.memory_space<vmem>>, vector<4x256xf32>,
    %c0_153 = arith.constant 0 : index
    %c0_154 = arith.constant 0 : index
    %243 = vector.load %arg4[%c0_153, %c0_154] : memref<16x72xf32, #tpu.memory_space<vmem>>, vector<16x72xf32>
    %c0_155 = arith.constant 0 : index
    %c0_156 = arith.constant 0 : index
    %244 = vector.load %arg13[%c0_155, %c0_156] : memref<144x256xf32, #tpu.memory_space<vmem>>, vector<72x256xf32>
    %cst_157 = arith.constant dense<0.000000e+00> : vector<16x256xf32>
    %245 = tpu.matmul %243, %244, %cst_157 {dimension_numbers = #tpu.dot_dimension_numbers<[1], [0], [0], [1], [0, 0, 1, 1], [], []>} : vector<16x72xf32>, vector<72x256xf32>, vector<16x256xf32> -> vector<16x256xf32>
    %c0_158 = arith.constant 0 : index
    %c0_159 = arith.constant 0 : index
    %246 = vector.load %arg5[%c0_158, %c0_159] : memref<16x1xf32, #tpu.memory_space<vmem>>, vector<16x1xf32>
    %247 = vector.broadcast %246 : vector<16x1xf32> to vector<16x256xf32>
    %248 = arith.addf %245, %247 : vector<16x256xf32>
    %cst_160 = arith.constant 0.000000e+00 : f32
    %249 = vector.broadcast %cst_160 : f32 to vector<16x256xf32>
    %250 = arith.maximumf %248, %249 : vector<16x256xf32>
    %c0_161 = arith.constant 0 : index
    %c17_162 = arith.constant 17 : index
    %251 = vector.load %arg12[%c0_161, %c17_162] : memref<16x290xf32, #tpu.memory_space<vmem>>, vector<16x256xf32>
    tpu.vector_store %arg12[%c0_161, %c17_162], %250 {strides = array<i32>} : memref<16x290xf32, #tpu.memory_space<vmem>>, vector<16x256xf32>,
    %c0_163 = arith.constant 0 : index
    %c0_164 = arith.constant 0 : index
    %252 = vector.load %arg12[%c0_163, %c0_164] : memref<16x290xf32, #tpu.memory_space<vmem>>, vector<16x256xf32>
    %253 = vector.broadcast %20 : vector<1x256xf32> to vector<16x256xf32>
    %254 = arith.mulf %252, %253 : vector<16x256xf32>
    %c0_165 = arith.constant 0 : index
    %c0_166 = arith.constant 0 : index
    %255 = vector.load %arg13[%c0_165, %c0_166] : memref<144x256xf32, #tpu.memory_space<vmem>>, vector<16x256xf32>
    tpu.vector_store %arg13[%c0_165, %c0_166], %254 {strides = array<i32>} : memref<144x256xf32, #tpu.memory_space<vmem>>, vector<16x256xf32>,
    %c0_167 = arith.constant 0 : index
    %c1_168 = arith.constant 1 : index
    %256 = vector.load %arg12[%c0_167, %c1_168] : memref<16x290xf32, #tpu.memory_space<vmem>>, vector<16x256xf32>
    %c16_169 = arith.constant 16 : index
    %c0_170 = arith.constant 0 : index
    %257 = vector.load %arg13[%c16_169, %c0_170] : memref<144x256xf32, #tpu.memory_space<vmem>>, vector<16x256xf32>
    tpu.vector_store %arg13[%c16_169, %c0_170], %256 {strides = array<i32>} : memref<144x256xf32, #tpu.memory_space<vmem>>, vector<16x256xf32>,
    %c0_171 = arith.constant 0 : index
    %c2_172 = arith.constant 2 : index
    %258 = vector.load %arg12[%c0_171, %c2_172] : memref<16x290xf32, #tpu.memory_space<vmem>>, vector<16x256xf32>
    %259 = vector.broadcast %24 : vector<1x256xf32> to vector<16x256xf32>
    %260 = arith.mulf %258, %259 : vector<16x256xf32>
    %c32_173 = arith.constant 32 : index
    %c0_174 = arith.constant 0 : index
    %261 = vector.load %arg13[%c32_173, %c0_174] : memref<144x256xf32, #tpu.memory_space<vmem>>, vector<16x256xf32>
    tpu.vector_store %arg13[%c32_173, %c0_174], %260 {strides = array<i32>} : memref<144x256xf32, #tpu.memory_space<vmem>>, vector<16x256xf32>,
    %c0_175 = arith.constant 0 : index
    %c16_176 = arith.constant 16 : index
    %262 = vector.load %arg12[%c0_175, %c16_176] : memref<16x290xf32, #tpu.memory_space<vmem>>, vector<16x256xf32>
    %263 = vector.broadcast %20 : vector<1x256xf32> to vector<16x256xf32>
    %264 = arith.mulf %262, %263 : vector<16x256xf32>
    %c48_177 = arith.constant 48 : index
    %c0_178 = arith.constant 0 : index
    %265 = vector.load %arg13[%c48_177, %c0_178] : memref<144x256xf32, #tpu.memory_space<vmem>>, vector<16x256xf32>
    tpu.vector_store %arg13[%c48_177, %c0_178], %264 {strides = array<i32>} : memref<144x256xf32, #tpu.memory_space<vmem>>, vector<16x256xf32>,
    %c0_179 = arith.constant 0 : index
    %c17_180 = arith.constant 17 : index
    %266 = vector.load %arg12[%c0_179, %c17_180] : memref<16x290xf32, #tpu.memory_space<vmem>>, vector<16x256xf32>
    %c64_181 = arith.constant 64 : index
    %c0_182 = arith.constant 0 : index
    %267 = vector.load %arg13[%c64_181, %c0_182] : memref<144x256xf32, #tpu.memory_space<vmem>>, vector<16x256xf32>
    tpu.vector_store %arg13[%c64_181, %c0_182], %266 {strides = array<i32>} : memref<144x256xf32, #tpu.memory_space<vmem>>, vector<16x256xf32>,
    %c0_183 = arith.constant 0 : index
    %c18_184 = arith.constant 18 : index
    %268 = vector.load %arg12[%c0_183, %c18_184] : memref<16x290xf32, #tpu.memory_space<vmem>>, vector<16x256xf32>
    %269 = vector.broadcast %24 : vector<1x256xf32> to vector<16x256xf32>
    %270 = arith.mulf %268, %269 : vector<16x256xf32>
    %c80 = arith.constant 80 : index
    %c0_185 = arith.constant 0 : index
    %271 = vector.load %arg13[%c80, %c0_185] : memref<144x256xf32, #tpu.memory_space<vmem>>, vector<16x256xf32>
    tpu.vector_store %arg13[%c80, %c0_185], %270 {strides = array<i32>} : memref<144x256xf32, #tpu.memory_space<vmem>>, vector<16x256xf32>,
    %c0_186 = arith.constant 0 : index
    %c32_187 = arith.constant 32 : index
    %272 = vector.load %arg12[%c0_186, %c32_187] : memref<16x290xf32, #tpu.memory_space<vmem>>, vector<16x256xf32>
    %273 = vector.broadcast %20 : vector<1x256xf32> to vector<16x256xf32>
    %274 = arith.mulf %272, %273 : vector<16x256xf32>
    %c96 = arith.constant 96 : index
    %c0_188 = arith.constant 0 : index
    %275 = vector.load %arg13[%c96, %c0_188] : memref<144x256xf32, #tpu.memory_space<vmem>>, vector<16x256xf32>
    tpu.vector_store %arg13[%c96, %c0_188], %274 {strides = array<i32>} : memref<144x256xf32, #tpu.memory_space<vmem>>, vector<16x256xf32>,
    %c0_189 = arith.constant 0 : index
    %c33_190 = arith.constant 33 : index
    %276 = vector.load %arg12[%c0_189, %c33_190] : memref<16x290xf32, #tpu.memory_space<vmem>>, vector<16x256xf32>
    %c112 = arith.constant 112 : index
    %c0_191 = arith.constant 0 : index
    %277 = vector.load %arg13[%c112, %c0_191] : memref<144x256xf32, #tpu.memory_space<vmem>>, vector<16x256xf32>
    tpu.vector_store %arg13[%c112, %c0_191], %276 {strides = array<i32>} : memref<144x256xf32, #tpu.memory_space<vmem>>, vector<16x256xf32>,
    %c0_192 = arith.constant 0 : index
    %c34_193 = arith.constant 34 : index
    %278 = vector.load %arg12[%c0_192, %c34_193] : memref<16x290xf32, #tpu.memory_space<vmem>>, vector<16x256xf32>
    %279 = vector.broadcast %24 : vector<1x256xf32> to vector<16x256xf32>
    %280 = arith.mulf %278, %279 : vector<16x256xf32>
    %c128 = arith.constant 128 : index
    %c0_194 = arith.constant 0 : index
    %281 = vector.load %arg13[%c128, %c0_194] : memref<144x256xf32, #tpu.memory_space<vmem>>, vector<16x256xf32>
    tpu.vector_store %arg13[%c128, %c0_194], %280 {strides = array<i32>} : memref<144x256xf32, #tpu.memory_space<vmem>>, vector<16x256xf32>,
    %c0_195 = arith.constant 0 : index
    %c0_196 = arith.constant 0 : index
    %282 = vector.load %arg6[%c0_195, %c0_196] : memref<16x144xf32, #tpu.memory_space<vmem>>, vector<16x144xf32>
    %c0_197 = arith.constant 0 : index
    %c0_198 = arith.constant 0 : index
    %283 = vector.load %arg13[%c0_197, %c0_198] : memref<144x256xf32, #tpu.memory_space<vmem>>, vector<144x256xf32>
    %cst_199 = arith.constant dense<0.000000e+00> : vector<16x256xf32>
    %284 = tpu.matmul %282, %283, %cst_199 {dimension_numbers = #tpu.dot_dimension_numbers<[1], [0], [0], [1], [0, 0, 1, 1], [], []>} : vector<16x144xf32>, vector<144x256xf32>, vector<16x256xf32> -> vector<16x256xf32>
    %c0_200 = arith.constant 0 : index
    %c0_201 = arith.constant 0 : index
    %285 = vector.load %arg7[%c0_200, %c0_201] : memref<16x1xf32, #tpu.memory_space<vmem>>, vector<16x1xf32>
    %286 = vector.broadcast %285 : vector<16x1xf32> to vector<16x256xf32>
    %287 = arith.addf %284, %286 : vector<16x256xf32>
    %cst_202 = arith.constant 0.000000e+00 : f32
    %288 = vector.broadcast %cst_202 : f32 to vector<16x256xf32>
    %289 = arith.maximumf %287, %288 : vector<16x256xf32>
    %c0_203 = arith.constant 0 : index
    %c17_204 = arith.constant 17 : index
    %290 = vector.load %arg12[%c0_203, %c17_204] : memref<16x290xf32, #tpu.memory_space<vmem>>, vector<16x256xf32>
    tpu.vector_store %arg12[%c0_203, %c17_204], %289 {strides = array<i32>} : memref<16x290xf32, #tpu.memory_space<vmem>>, vector<16x256xf32>,
    %c0_205 = arith.constant 0 : index
    %c0_206 = arith.constant 0 : index
    %291 = vector.load %arg12[%c0_205, %c0_206] : memref<16x290xf32, #tpu.memory_space<vmem>>, vector<16x256xf32>
    %292 = vector.broadcast %20 : vector<1x256xf32> to vector<16x256xf32>
    %293 = arith.mulf %291, %292 : vector<16x256xf32>
    %c0_207 = arith.constant 0 : index
    %c0_208 = arith.constant 0 : index
    %294 = vector.load %arg13[%c0_207, %c0_208] : memref<144x256xf32, #tpu.memory_space<vmem>>, vector<16x256xf32>
    tpu.vector_store %arg13[%c0_207, %c0_208], %293 {strides = array<i32>} : memref<144x256xf32, #tpu.memory_space<vmem>>, vector<16x256xf32>,
    %c0_209 = arith.constant 0 : index
    %c1_210 = arith.constant 1 : index
    %295 = vector.load %arg12[%c0_209, %c1_210] : memref<16x290xf32, #tpu.memory_space<vmem>>, vector<16x256xf32>
    %c16_211 = arith.constant 16 : index
    %c0_212 = arith.constant 0 : index
    %296 = vector.load %arg13[%c16_211, %c0_212] : memref<144x256xf32, #tpu.memory_space<vmem>>, vector<16x256xf32>
    tpu.vector_store %arg13[%c16_211, %c0_212], %295 {strides = array<i32>} : memref<144x256xf32, #tpu.memory_space<vmem>>, vector<16x256xf32>,
    %c0_213 = arith.constant 0 : index
    %c2_214 = arith.constant 2 : index
    %297 = vector.load %arg12[%c0_213, %c2_214] : memref<16x290xf32, #tpu.memory_space<vmem>>, vector<16x256xf32>
    %298 = vector.broadcast %24 : vector<1x256xf32> to vector<16x256xf32>
    %299 = arith.mulf %297, %298 : vector<16x256xf32>
    %c32_215 = arith.constant 32 : index
    %c0_216 = arith.constant 0 : index
    %300 = vector.load %arg13[%c32_215, %c0_216] : memref<144x256xf32, #tpu.memory_space<vmem>>, vector<16x256xf32>
    tpu.vector_store %arg13[%c32_215, %c0_216], %299 {strides = array<i32>} : memref<144x256xf32, #tpu.memory_space<vmem>>, vector<16x256xf32>,
    %c0_217 = arith.constant 0 : index
    %c16_218 = arith.constant 16 : index
    %301 = vector.load %arg12[%c0_217, %c16_218] : memref<16x290xf32, #tpu.memory_space<vmem>>, vector<16x256xf32>
    %302 = vector.broadcast %20 : vector<1x256xf32> to vector<16x256xf32>
    %303 = arith.mulf %301, %302 : vector<16x256xf32>
    %c48_219 = arith.constant 48 : index
    %c0_220 = arith.constant 0 : index
    %304 = vector.load %arg13[%c48_219, %c0_220] : memref<144x256xf32, #tpu.memory_space<vmem>>, vector<16x256xf32>
    tpu.vector_store %arg13[%c48_219, %c0_220], %303 {strides = array<i32>} : memref<144x256xf32, #tpu.memory_space<vmem>>, vector<16x256xf32>,
    %c0_221 = arith.constant 0 : index
    %c17_222 = arith.constant 17 : index
    %305 = vector.load %arg12[%c0_221, %c17_222] : memref<16x290xf32, #tpu.memory_space<vmem>>, vector<16x256xf32>
    %c64_223 = arith.constant 64 : index
    %c0_224 = arith.constant 0 : index
    %306 = vector.load %arg13[%c64_223, %c0_224] : memref<144x256xf32, #tpu.memory_space<vmem>>, vector<16x256xf32>
    tpu.vector_store %arg13[%c64_223, %c0_224], %305 {strides = array<i32>} : memref<144x256xf32, #tpu.memory_space<vmem>>, vector<16x256xf32>,
    %c0_225 = arith.constant 0 : index
    %c18_226 = arith.constant 18 : index
    %307 = vector.load %arg12[%c0_225, %c18_226] : memref<16x290xf32, #tpu.memory_space<vmem>>, vector<16x256xf32>
    %308 = vector.broadcast %24 : vector<1x256xf32> to vector<16x256xf32>
    %309 = arith.mulf %307, %308 : vector<16x256xf32>
    %c80_227 = arith.constant 80 : index
    %c0_228 = arith.constant 0 : index
    %310 = vector.load %arg13[%c80_227, %c0_228] : memref<144x256xf32, #tpu.memory_space<vmem>>, vector<16x256xf32>
    tpu.vector_store %arg13[%c80_227, %c0_228], %309 {strides = array<i32>} : memref<144x256xf32, #tpu.memory_space<vmem>>, vector<16x256xf32>,
    %c0_229 = arith.constant 0 : index
    %c32_230 = arith.constant 32 : index
    %311 = vector.load %arg12[%c0_229, %c32_230] : memref<16x290xf32, #tpu.memory_space<vmem>>, vector<16x256xf32>
    %312 = vector.broadcast %20 : vector<1x256xf32> to vector<16x256xf32>
    %313 = arith.mulf %311, %312 : vector<16x256xf32>
    %c96_231 = arith.constant 96 : index
    %c0_232 = arith.constant 0 : index
    %314 = vector.load %arg13[%c96_231, %c0_232] : memref<144x256xf32, #tpu.memory_space<vmem>>, vector<16x256xf32>
    tpu.vector_store %arg13[%c96_231, %c0_232], %313 {strides = array<i32>} : memref<144x256xf32, #tpu.memory_space<vmem>>, vector<16x256xf32>,
    %c0_233 = arith.constant 0 : index
    %c33_234 = arith.constant 33 : index
    %315 = vector.load %arg12[%c0_233, %c33_234] : memref<16x290xf32, #tpu.memory_space<vmem>>, vector<16x256xf32>
    %c112_235 = arith.constant 112 : index
    %c0_236 = arith.constant 0 : index
    %316 = vector.load %arg13[%c112_235, %c0_236] : memref<144x256xf32, #tpu.memory_space<vmem>>, vector<16x256xf32>
    tpu.vector_store %arg13[%c112_235, %c0_236], %315 {strides = array<i32>} : memref<144x256xf32, #tpu.memory_space<vmem>>, vector<16x256xf32>,
    %c0_237 = arith.constant 0 : index
    %c34_238 = arith.constant 34 : index
    %317 = vector.load %arg12[%c0_237, %c34_238] : memref<16x290xf32, #tpu.memory_space<vmem>>, vector<16x256xf32>
    %318 = vector.broadcast %24 : vector<1x256xf32> to vector<16x256xf32>
    %319 = arith.mulf %317, %318 : vector<16x256xf32>
    %c128_239 = arith.constant 128 : index
    %c0_240 = arith.constant 0 : index
    %320 = vector.load %arg13[%c128_239, %c0_240] : memref<144x256xf32, #tpu.memory_space<vmem>>, vector<16x256xf32>
    tpu.vector_store %arg13[%c128_239, %c0_240], %319 {strides = array<i32>} : memref<144x256xf32, #tpu.memory_space<vmem>>, vector<16x256xf32>,
    %c0_241 = arith.constant 0 : index
    %c0_242 = arith.constant 0 : index
    %321 = vector.load %arg8[%c0_241, %c0_242] : memref<4x144xf32, #tpu.memory_space<vmem>>, vector<4x144xf32>
    %c0_243 = arith.constant 0 : index
    %c0_244 = arith.constant 0 : index
    %322 = vector.load %arg13[%c0_243, %c0_244] : memref<144x256xf32, #tpu.memory_space<vmem>>, vector<144x256xf32>
    %cst_245 = arith.constant dense<0.000000e+00> : vector<4x256xf32>
    %323 = tpu.matmul %321, %322, %cst_245 {dimension_numbers = #tpu.dot_dimension_numbers<[1], [0], [0], [1], [0, 0, 1, 1], [], []>} : vector<4x144xf32>, vector<144x256xf32>, vector<4x256xf32> -> vector<4x256xf32>
    %c0_246 = arith.constant 0 : index
    %c0_247 = arith.constant 0 : index
    %324 = vector.load %arg9[%c0_246, %c0_247] : memref<4x1xf32, #tpu.memory_space<vmem>>, vector<4x1xf32>
    %325 = vector.broadcast %324 : vector<4x1xf32> to vector<4x256xf32>
    %326 = arith.addf %323, %325 : vector<4x256xf32>
    %327 = arith.subf %181, %326 : vector<4x256xf32>
    %c0_248 = arith.constant 0 : index
    %c0_249 = arith.constant 0 : index
    %c0_250 = arith.constant 0 : index
    %328 = vector.load %arg10[%c0_248, %c0_249, %c0_250] : memref<1x4x256xf32, #tpu.memory_space<vmem>>, vector<1x4x256xf32>
    %329 = vector.shape_cast %328 : vector<1x4x256xf32> to vector<4x256xf32>
    %330 = vector.shape_cast %327 : vector<4x256xf32> to vector<1x4x256xf32>
    tpu.vector_store %arg10[%c0_248, %c0_249, %c0_250], %330 {strides = array<i32>} : memref<1x4x256xf32, #tpu.memory_space<vmem>>, vector<1x4x256xf32>,
    return
  }
  func.func @transform_0(%arg0: i32) -> i32 {
    %c0_i32 = arith.constant 0 : i32
    %c0_i32_0 = arith.constant 0 : i32
    return %c0_i32 : i32
  }
  func.func @transform_1(%arg0: i32) -> (i32, i32, i32) {
    %c0_i32 = arith.constant 0 : i32
    %c0_i32_0 = arith.constant 0 : i32
    %c0_i32_1 = arith.constant 0 : i32
    return %arg0, %c0_i32, %c0_i32_0 : i32, i32, i32
  }
  func.func @transform_2(%arg0: i32) -> (i32, i32, i32) {
    %c0_i32 = arith.constant 0 : i32
    %c0_i32_0 = arith.constant 0 : i32
    %c0_i32_1 = arith.constant 0 : i32
    return %arg0, %c0_i32, %c0_i32_0 : i32, i32, i32
  }
  func.func @transform_3(%arg0: i32) -> (i32, i32) {
    %c0_i32 = arith.constant 0 : i32
    %c0_i32_0 = arith.constant 0 : i32
    %c0_i32_1 = arith.constant 0 : i32
    return %c0_i32, %c0_i32_0 : i32, i32
  }
  func.func @transform_4(%arg0: i32) -> (i32, i32) {
    %c0_i32 = arith.constant 0 : i32
    %c0_i32_0 = arith.constant 0 : i32
    %c0_i32_1 = arith.constant 0 : i32
    return %c0_i32, %c0_i32_0 : i32, i32
  }
  func.func @transform_5(%arg0: i32) -> (i32, i32) {
    %c0_i32 = arith.constant 0 : i32
    %c0_i32_0 = arith.constant 0 : i32
    %c0_i32_1 = arith.constant 0 : i32
    return %c0_i32, %c0_i32_0 : i32, i32
  }
  func.func @transform_6(%arg0: i32) -> (i32, i32) {
    %c0_i32 = arith.constant 0 : i32
    %c0_i32_0 = arith.constant 0 : i32
    %c0_i32_1 = arith.constant 0 : i32
    return %c0_i32, %c0_i32_0 : i32, i32
  }
  func.func @transform_7(%arg0: i32) -> (i32, i32) {
    %c0_i32 = arith.constant 0 : i32
    %c0_i32_0 = arith.constant 0 : i32
    %c0_i32_1 = arith.constant 0 : i32
    return %c0_i32, %c0_i32_0 : i32, i32
  }
  func.func @transform_8(%arg0: i32) -> (i32, i32) {
    %c0_i32 = arith.constant 0 : i32
    %c0_i32_0 = arith.constant 0 : i32
    %c0_i32_1 = arith.constant 0 : i32
    return %c0_i32, %c0_i32_0 : i32, i32
  }
  func.func @transform_9(%arg0: i32) -> (i32, i32, i32) {
    %c0_i32 = arith.constant 0 : i32
    %c0_i32_0 = arith.constant 0 : i32
    %c0_i32_1 = arith.constant 0 : i32
    return %arg0, %c0_i32, %c0_i32_0 : i32, i32, i32
  }
}

</mosaic_0001>

<bundles_post_ra>
// kernel: _lambda_.1
= control target key start
LH: loop header
LB: loop body
LE: loop exit
PB: predicated region body
PF: predicated region fallthrough
CT: control target
= control target key end

     0   :  { %s2632_s11 = smov 0   ;;  %s3584_s0 = inlined_call_operand.<no memory space> [shape: f32[1], index: 0, kind: input, shape index: {}]   ;;  %s3585_s1 = inlined_call_operand.vmem [shape: f32[2,4,256], index: 1, kind: input, shape index: {}]   ;;  %s3586_s2 = inlined_call_operand.vmem [shape: f32[2,4,256], index: 2, kind: input, shape index: {}]   ;;  %s3587_s3 = inlined_call_operand.vmem [shape: f32[16,72], index: 3, kind: input, shape index: {}]   ;;  %s3588_s4 = inlined_call_operand.vmem [shape: f32[16,1], index: 4, kind: input, shape index: {}, may-alias: {4,6}]   ;;  %s3589_s5 = inlined_call_operand.vmem [shape: f32[16,144], index: 5, kind: input, shape index: {}]   ;;  %s3590_s6 = inlined_call_operand.vmem [shape: f32[16,1], index: 6, kind: input, shape index: {}, may-alias: {4,6}]   ;;  %s3591_s7 = inlined_call_operand.vmem [shape: f32[4,144], index: 7, kind: input, shape index: {}]   ;;  %s3592_s8 = inlined_call_operand.vmem [shape: f32[4,1], index: 8, kind: input, shape index: {}]   ;;  %s3593_s9 = inlined_call_operand.vmem [shape: f32[2,4,256], index: 9, kind: output, shape index: {}]  }
   0x1   :  { %14 = sst [smem:[#allocation5]] %s3584_s0 }
   0x2 LB: > { %s2382_s12 = sadd.s32 4294967295, %s2561_s11   ;;  %p2386_p0 = scmp.ge.s32.totalorder %s2561_s11, 1  ;;  %s2561_s11 = sphi %s2632_s11, %s20_s11  }
   0x3   : > { %p298_p1 = scmp.lt.s32.totalorder %s2561_s11, 3 }
   0x5   : > { %p299_p2 = pnand %p2386_p0, %p298_p1 }
   0x6   : > { %p339_p3 = scmp.lt.s32.totalorder (!%p299_p2), %s2382_s12, 1  ;;  %v354_v0 = vlaneseq (!%p299_p2)  ;;  %vm394_vm0 = vcmask (!%p299_p2), 273408   ;;  %v2563_v1 = vmov (!%p299_p2), 0.0   ;;  %vm3594_vm1 = vcmask (!%p299_p2), 277504   ;;  %s2564_s16 = smov (!%p299_p2), 17  }
   0x7   : > { %302 = sbr.rel (%p299_p2) target bundleno = 2234 (0x8ba), region = 56  ;;  %393 = vst [vmem:[#allocation2] sm:$0xff] (!%p299_p2), %v2563_v1  ;;  %396 = vst [vmem:[#allocation3] sm:$0xff] (!%p299_p2), %v2563_v1  ;;  %1282 = vmatprep.mubr.f32.mxu0 (!%p299_p2), %v2563_v1  ;;  %s2565_s17 = smov (!%p299_p2), 16   ;;  %vm414_vm6 = vcmask (!%p299_p2), 1043592   ;;  %vm415_vm7 = vcmask (!%p299_p2), 1047556  }
   0x8   : > { %400 = vst [vmem:[#allocation3 + $0x18] sm:$0xff] (!%p299_p2), %v2563_v1  ;;  %395 = vst.msk [vmem:[#allocation2 + $0x8] sm:$0xf] (!%p299_p2), %vm394_vm0, %v2563_v1  ;;  %v355_v2 = vand.u32 (!%p299_p2), 127, %v354_v0  ;;  %s2566_s18 = smov (!%p299_p2), 2   ;;  %s2567_s19 = smov (!%p299_p2), 18  }
   0x9   : > { %399 = vst.msk [vmem:[#allocation3 + $0x10] sm:$0xff] (!%p299_p2), %vm3594_vm1, %v2563_v1  ;;  %402 = vst.msk [vmem:[#allocation3 + $0x28] sm:$0xff] (!%p299_p2), %vm3594_vm1, %v2563_v1  ;;  %s2568_s20 = smov (!%p299_p2), 32   ;;  %s2569_s21 = smov (!%p299_p2), 34   ;;  %vm410_vm8 = vcmask (!%p299_p2), 138240   ;;  %vm418_vm9 = vcmask (!%p299_p2), 134144  }
   0xa   : > { %v356_v3 = vadd.s32 (!%p299_p2), 128, %v355_v2  ;;  %v361_v4 = vand.u32 (!%p299_p2), 15, %v355_v2  ;;  %vm2673_vm10 = vmor (!%p299_p2), %vm415_vm7, %vm414_vm6  ;;  %s2570_s22 = smov (!%p299_p2), 127   ;;  %vm450_vm11 = vcmask (!%p299_p2), 15360   ;;  %s2571_s23 = smov (!%p299_p2), 111   ;;  %vm474_vm12 = vcmask (!%p299_p2), 130048  }
   0xb   : > { %s2572_s24 = smov (!%p299_p2), 95   ;;  %vm513_vm13 = vcmask (!%p299_p2), 146432   ;;  %s2573_s25 = smov (!%p299_p2), 126   ;;  %vm537_vm14 = vcmask (!%p299_p2), 261120   ;;  %vm438_vm15 = vcmask (!%p299_p2), 1043456   ;;  %vm440_vm0 = vcmask (!%p299_p2), 1039360  }
   0xc   : > { %v368_v6 = vand.u32 (!%p299_p2), 15, %v356_v3  ;;  %vm381_vm2 = vcmp.ge.s32.totalorder (!%p299_p2), %v361_v4, 1  ;;  %vm387_vm3 = vcmp.le.s32.totalorder (!%p299_p2), %v361_v4, 14  ;;  %s2574_s26 = smov (!%p299_p2), 112   ;;  %s2575_s27 = smov (!%p299_p2), 110   ;;  %vm554_vm6 = vcmask (!%p299_p2), 785408  }
   0xd   : > { %v2652_v7 = vsel (!%p299_p2), %vm381_vm2, 1.0, %v2563_v1  ;;  %v2654_v8 = vsel (!%p299_p2), %vm387_vm3, 1.0, %v2563_v1  ;;  %s2576_s28 = smov (!%p299_p2), 96   ;;  %vm467_vm2 = vcmask (!%p299_p2), 1031168   ;;  %vm491_vm3 = vcmask (!%p299_p2), 916480   ;;  %s403_s13 = sld [smem:[#allocation5]] (!%p299_p2) }
   0xe   : > { %s3599_s12 = smov (!%p339_p3, %s2382_s12), 1  ;;  %vm382_vm4 = vcmp.ge.s32.totalorder %v368_v6, 1  ;;  %vm388_vm5 = vcmp.le.s32.totalorder %v368_v6, 14  ;;  %vm565_vm7 = vcmask 777216  }
   0xf   : > { %s2640_s0 = sshll.u32 %s3599_s12, 3  ;;  %v2656_v9 = vsel %vm382_vm4, 1.0, %v2563_v1  ;;  %v2658_v10 = vsel %vm388_vm5, 1.0, %v2563_v1  ;;  %s2577_s12 = smov 94   ;;  %vm506_vm4 = vcmask 908288   ;;  %vm530_vm5 = vcmask 900096  }
  0x10   : > { %s343_s15 = scalar_lea.vmem %s3585_s1, %s2640_s0  ;;  %v2662_v11 = vcombine.low %v2652_v7, %v2656_v9  ;;  %v446_v12 = vcombine.low %v2654_v8, %v2658_v10  ;;  %s348_s10 = scalar_lea.vmem %s3586_s2, %s2640_s0 }
  0x11   : > { %v2646_v5 = vld [vmem:[%s343_s15] sm:$0xff] }
  0x12   : > { %407 = vrot.lane.b32.xlu0 %v2646_v5, %s2564_s16  ;;  %471 = vrot.lane.b32.xlu1 %v2662_v11, %s2565_s17  ;;  %v405_v58 = vld [vmem:[%s348_s10] sm:$0xff] }
  0x16   : > { %447 = vrot.lane.b32.xlu0 %v446_v12, %s2566_s18  ;;  %510 = vrot.lane.b32.xlu1 %v446_v12, %s2567_s19 }
  0x1a   : > { %534 = vrot.lane.b32.xlu0 %v2662_v11, %s2568_s20  ;;  %569 = vrot.lane.b32.xlu1 %v446_v12, %s2569_s21 }
  0x84   : > { %v408_v13 = vpop.permute.xlu0 %407  ;;  %v472_v20 = vpop.permute.xlu1 %471 }
  0x85   : > { %v409_v15 = vrot.slane %v408_v13, 4  ;;  %v2689_v26 = vrot.slane %v472_v20, 4 }
  0x87   : > { %v411_v16 = vsel %vm410_vm8, %v409_v15, %v408_v13  ;;  %419 = vst.msk [vmem:[#allocation2 + $0x8] sm:$0xf] %vm418_vm9, %v409_v15  ;;  %v2702_v31 = vsel %vm474_vm12, %v2689_v26, %v472_v20 }
  0x88   : > { %417 = vst.msk [vmem:[#allocation2] sm:$0xff] %vm2673_vm10, %v411_v16  ;;  %v448_v21 = vpop.permute.xlu0 %447  ;;  %v511_v28 = vpop.permute.xlu1 %510 }
  0x89   : > { %v2684_v23 = vrot.slane %v448_v21, 4  ;;  %v2704_v32 = vrot.slane %v511_v28, 4 }
  0x8b   : > { %v2693_v27 = vsel %vm450_vm11, %v2684_v23, %v448_v21  ;;  %v2713_v38 = vsel %vm513_vm13, %v2704_v32, %v511_v28 }
  0x8c   : > { %v535_v33 = vpop.permute.xlu0 %534  ;;  %v570_v40 = vpop.permute.xlu1 %569 }
  0x8d   : > { %v2715_v39 = vrot.slane %v535_v33, 4  ;;  %v2726_v46 = vrot.slane %v570_v40, 4 }
  0x8e   : > { %v427_v17 = vld [vmem:[#allocation2 + $0x8] sm:$0xf] }
  0x8f   : > { %v429_v18 = vmul.f32 0.125, %v427_v17  ;;  %v2681_v19 = vld [vmem:[#allocation2] sm:$0xff]  ;;  %v496_v24 = vmul.f32 0.25, %v427_v17  ;;  %v455_v29 = vmul.f32 %v2684_v23, %v427_v17  ;;  %v479_v35 = vmul.f32 %v2689_v26, %v427_v17 }
  0x90   : > { %v428_v22 = vmul.f32 0.125, %v2681_v19  ;;  %v495_v25 = vmul.f32 0.25, %v2681_v19  ;;  %v454_v30 = vmul.f32 %v2693_v27, %v2681_v19  ;;  %v478_v37 = vmul.f32 %v2702_v31, %v2681_v19 }
  0x91   : > { %434 = vrot.lane.b32.xlu1 %v429_v18, %s2570_s22  ;;  %v457_v34 = vmul.f32 0.0625, %v455_v29  ;;  %v481_v41 = vmul.f32 0.125, %v479_v35  ;;  %v518_v42 = vmul.f32 %v2704_v32, %v427_v17  ;;  %v517_v44 = vmul.f32 %v2713_v38, %v2681_v19 }
  0x92   : > { %432 = vrot.lane.b32.xlu0 %v428_v22, %s2570_s22  ;;  %v456_v36 = vmul.f32 0.0625, %v454_v30  ;;  %v480_v43 = vmul.f32 0.125, %v478_v37  ;;  %v2724_v45 = vsel %vm537_vm14, %v2715_v39, %v535_v33  ;;  %v542_v48 = vmul.f32 %v2715_v39, %v427_v17 }
  0x93   : > { %v520_v47 = vmul.f32 0.125, %v518_v42  ;;  %v519_v49 = vmul.f32 0.125, %v517_v44  ;;  %v541_v50 = vmul.f32 %v2724_v45, %v2681_v19  ;;  %v2735_v51 = vsel %vm3594_vm1, %v2726_v46, %v570_v40 }
  0x94   : > { %v544_v52 = vmul.f32 0.0625, %v542_v48  ;;  %v576_v53 = vmul.f32 %v2726_v46, %v427_v17  ;;  %v575_v55 = vmul.f32 %v2735_v51, %v2681_v19  ;;  %v425_v3 = vmul.f32 %v2662_v11, %v2681_v19 }
  0x95   : > { %501 = vrot.lane.b32.xlu1 %v496_v24, %s2571_s23  ;;  %v543_v54 = vmul.f32 0.0625, %v541_v50  ;;  %vm588_vm1 = vcmask 769024  }
  0x96   : > { %499 = vrot.lane.b32.xlu0 %v495_v25, %s2571_s23  ;;  %v578_v56 = vmul.f32 0.0625, %v576_v53  ;;  %v577_v57 = vmul.f32 0.0625, %v575_v55  ;;  %v426_v17 = vmul.f32 0.0625, %v425_v3 }
  0x99   : > { %560 = vrot.lane.b32.xlu1 %v429_v18, %s2572_s24 }
  0x9a   : > { %558 = vrot.lane.b32.xlu0 %v428_v22, %s2572_s24 }
  0x9d   : > { %462 = vrot.lane.b32.xlu1 %v457_v34, %s2573_s25 }
  0x9e   : > { %460 = vrot.lane.b32.xlu0 %v456_v36, %s2573_s25 }
  0xa1   : > { %486 = vrot.lane.b32.xlu1 %v481_v41, %s2574_s26 }
  0xa2   : > { %484 = vrot.lane.b32.xlu0 %v480_v43, %s2574_s26 }
  0xa5   : > { %525 = vrot.lane.b32.xlu1 %v520_v47, %s2575_s27 }
  0xa6   : > { %523 = vrot.lane.b32.xlu0 %v519_v49, %s2575_s27 }
  0xa9   : > { %549 = vrot.lane.b32.xlu1 %v544_v52, %s2576_s28 }
  0xaa   : > { %547 = vrot.lane.b32.xlu0 %v543_v54, %s2576_s28 }
  0xad   : > { %583 = vrot.lane.b32.xlu1 %v578_v56, %s2577_s12 }
  0xae   : > { %581 = vrot.lane.b32.xlu0 %v577_v57, %s2577_s12 }
  0xb1   : > { %724 = vrot.lane.b32.xlu1 %v405_v58, %s2564_s16 }
 0x103   : > { %v435_v59 = vpop.permute.xlu1 %434 }
 0x104   : > { %v433_v60 = vpop.permute.xlu0 %432  ;;  %v437_v63 = vrot.slane %v435_v59, 4 }
 0x105   : > { %v436_v0 = vrot.slane %v433_v60, 4 }
 0x107   : > { %v502_v61 = vpop.permute.xlu1 %501  ;;  %v439_v4 = vsel %vm438_vm15, %v436_v0, %v437_v63 }
 0x108   : > { %v500_v62 = vpop.permute.xlu0 %499  ;;  %v441_v16 = vsel %vm440_vm0, %v433_v60, %v439_v4  ;;  %v504_v18 = vrot.slane %v502_v61, 4 }
 0x109   : > { %v503_v20 = vrot.slane %v500_v62, 4  ;;  %v443_v28 = vadd.f32 %v441_v16, %v426_v17 }
 0x10b   : > { %v561_v1 = vpop.permute.xlu1 %560  ;;  %v505_v30 = vsel %vm438_vm15, %v503_v20, %v504_v18 }
 0x10c   : > { %v559_v2 = vpop.permute.xlu0 %558  ;;  %v507_v43 = vsel %vm506_vm4, %v500_v62, %v505_v30  ;;  %v563_v44 = vrot.slane %v561_v1, 4 }
 0x10d   : > { %v562_v47 = vrot.slane %v559_v2, 4 }
 0x10f   : > { %v463_v6 = vpop.permute.xlu1 %462  ;;  %v564_v56 = vsel %vm438_vm15, %v562_v47, %v563_v44 }
 0x110   : > { %v465_v12 = vrot.slane %v463_v6, 4  ;;  %v461_v13 = vpop.permute.xlu0 %460  ;;  %v566_v1 = vsel %vm565_vm7, %v559_v2, %v564_v56 }
 0x111   : > { %v464_v15 = vrot.slane %v461_v13, 4 }
 0x113   : > { %v466_v21 = vsel %vm438_vm15, %v464_v15, %v465_v12  ;;  %v487_v22 = vpop.permute.xlu1 %486 }
 0x114   : > { %v468_v24 = vsel %vm467_vm2, %v461_v13, %v466_v21  ;;  %v489_v25 = vrot.slane %v487_v22, 4  ;;  %v485_v19 = vpop.permute.xlu0 %484 }
 0x115   : > { %v488_v29 = vrot.slane %v485_v19, 4  ;;  %v470_v33 = vadd.f32 %v468_v24, %v443_v28 }
 0x117   : > { %v490_v34 = vsel %vm438_vm15, %v488_v29, %v489_v25  ;;  %v526_v35 = vpop.permute.xlu1 %525 }
 0x118   : > { %v492_v36 = vsel %vm491_vm3, %v485_v19, %v490_v34  ;;  %v528_v37 = vrot.slane %v526_v35, 4  ;;  %v524_v40 = vpop.permute.xlu0 %523 }
 0x119   : > { %v494_v41 = vadd.f32 %v492_v36, %v470_v33  ;;  %v527_v42 = vrot.slane %v524_v40, 4 }
 0x11b   : > { %v509_v48 = vadd.f32 %v507_v43, %v494_v41  ;;  %v529_v49 = vsel %vm438_vm15, %v527_v42, %v528_v37  ;;  %v550_v50 = vpop.permute.xlu1 %549 }
 0x11c   : > { %v531_v52 = vsel %vm530_vm5, %v524_v40, %v529_v49  ;;  %v552_v53 = vrot.slane %v550_v50, 4  ;;  %v548_v54 = vpop.permute.xlu0 %547 }
 0x11d   : > { %v551_v55 = vrot.slane %v548_v54, 4  ;;  %v533_v57 = vadd.f32 %v531_v52, %v509_v48 }
 0x11f   : > { %v553_v58 = vsel %vm438_vm15, %v551_v55, %v552_v53  ;;  %v584_v59 = vpop.permute.xlu1 %583 }
 0x120   : > { %v555_v60 = vsel %vm554_vm6, %v548_v54, %v553_v58  ;;  %v586_v61 = vrot.slane %v584_v59, 4  ;;  %v582_v62 = vpop.permute.xlu0 %581 }
 0x121   : > { %v557_v63 = vadd.f32 %v555_v60, %v533_v57  ;;  %v585_v0 = vrot.slane %v582_v62, 4 }
 0x123   : > { %v587_v3 = vsel %vm438_vm15, %v585_v0, %v586_v61  ;;  %v568_v4 = vadd.f32 %v566_v1, %v557_v63  ;;  %v725_v16 = vpop.permute.xlu1 %724 }
 0x124   : > { %v589_v6 = vsel %vm588_vm1, %v582_v62, %v587_v3  ;;  %v726_v18 = vrot.slane %v725_v16, 4 }
 0x125   : > { %v591_v12 = vadd.f32 %v589_v6, %v568_v4 }
 0x126   : > { %v727_v2 = vsel %vm410_vm8, %v726_v18, %v725_v16 }
 0x127   : > { %593 = vrot.lane.b32.xlu0 %v591_v12, %s2564_s16 }
 0x199   : > { %v594_v13 = vpop.permute.xlu0 %593 }
 0x19a   : > { %v595_v15 = vrot.slane %v594_v13, 4 }
 0x19c   : > { %v596_v17 = vsel %vm410_vm8, %v595_v15, %v594_v13  ;;  %600 = vst.msk [vmem:[#allocation2 + $0x8] sm:$0xf] %vm418_vm9, %v595_v15 }
 0x19d   : > { %599 = vst.msk [vmem:[#allocation2] sm:$0xff] %vm2673_vm10, %v596_v17 }
 0x1a3   : > { %v604_v20 = vld [vmem:[#allocation2 + $0x8] sm:$0xf] }
 0x1a4   : > { %v2775_v21 = vld [vmem:[#allocation2] sm:$0xff]  ;;  %731 = vst.msk [vmem:[#allocation2 + $0x8] sm:$0xf] %vm418_vm9, %v726_v18  ;;  %v606_v22 = vmul.f32 0.125, %v604_v20  ;;  %v652_v25 = vmul.f32 0.25, %v604_v20  ;;  %v620_v28 = vmul.f32 %v604_v20, %v2684_v23  ;;  %v636_v33 = vmul.f32 %v604_v20, %v2689_v26 }
 0x1a5   : > { %730 = vst.msk [vmem:[#allocation2] sm:$0xff] %vm2673_vm10, %v727_v2  ;;  %v605_v24 = vmul.f32 0.125, %v2775_v21  ;;  %v651_v19 = vmul.f32 0.25, %v2775_v21  ;;  %v619_v29 = vmul.f32 %v2775_v21, %v2693_v27  ;;  %v635_v35 = vmul.f32 %v2775_v21, %v2702_v31 }
 0x1a6   : > { %611 = vrot.lane.b32.xlu1 %v606_v22, %s2570_s22  ;;  %v622_v30 = vmul.f32 0.0625, %v620_v28  ;;  %v638_v37 = vmul.f32 0.125, %v636_v33  ;;  %v666_v40 = vmul.f32 %v604_v20, %v2704_v32  ;;  %v665_v43 = vmul.f32 %v2775_v21, %v2713_v38 }
 0x1a7   : > { %609 = vrot.lane.b32.xlu0 %v605_v24, %s2570_s22  ;;  %v621_v34 = vmul.f32 0.0625, %v619_v29  ;;  %v637_v42 = vmul.f32 0.125, %v635_v35  ;;  %v682_v48 = vmul.f32 %v604_v20, %v2715_v39  ;;  %v681_v50 = vmul.f32 %v2775_v21, %v2724_v45 }
 0x1a8   : > { %v668_v47 = vmul.f32 0.125, %v666_v40  ;;  %v667_v49 = vmul.f32 0.125, %v665_v43  ;;  %v708_v53 = vmul.f32 %v604_v20, %v2726_v46  ;;  %v707_v55 = vmul.f32 %v2775_v21, %v2735_v51 }
 0x1a9   : > { %v684_v52 = vmul.f32 0.0625, %v682_v48  ;;  %v683_v54 = vmul.f32 0.0625, %v681_v50 }
 0x1aa   : > { %657 = vrot.lane.b32.xlu1 %v652_v25, %s2571_s23  ;;  %v710_v56 = vmul.f32 0.0625, %v708_v53  ;;  %v709_v57 = vmul.f32 0.0625, %v707_v55 }
 0x1ab   : > { %655 = vrot.lane.b32.xlu0 %v651_v19, %s2571_s23  ;;  %v735_v58 = vld [vmem:[#allocation2 + $0x8] sm:$0xf] }
 0x1ac   : > { %v2796_v36 = vld [vmem:[#allocation2] sm:$0xff]  ;;  %v737_v59 = vmul.f32 0.125, %v735_v58  ;;  %v783_v61 = vmul.f32 0.25, %v735_v58  ;;  %v751_v63 = vmul.f32 %v735_v58, %v2684_v23  ;;  %v767_v3 = vmul.f32 %v735_v58, %v2689_v26  ;;  %v882_v33 = vld [vmem:[#allocation2 + $0x8] sm:$0xf] }
 0x1ad   : > { %v2801_v41 = vmul.f32 %v2796_v36, %v2662_v11  ;;  %v736_v60 = vmul.f32 0.125, %v2796_v36  ;;  %v782_v62 = vmul.f32 0.25, %v2796_v36  ;;  %v2831_v0 = vmul.f32 %v2796_v36, %v2693_v27 }
 0x1ae   : > { %699 = vrot.lane.b32.xlu1 %v606_v22, %s2572_s24  ;;  %v753_v1 = vmul.f32 0.0625, %v751_v63  ;;  %v766_v6 = vmul.f32 %v2796_v36, %v2702_v31  ;;  %v769_v12 = vmul.f32 0.125, %v767_v3  ;;  %v797_v13 = vmul.f32 %v735_v58, %v2704_v32 }
 0x1af   : > { %697 = vrot.lane.b32.xlu0 %v605_v24, %s2572_s24  ;;  %v859_v44 = vcombine.high %v2801_v41, %v2801_v41  ;;  %861 = vst [vmem:[#allocation4] sm:$0xf] %v2801_v41  ;;  %v752_v4 = vmul.f32 0.0625, %v2831_v0  ;;  %v2844_v16 = vmul.f32 %v2796_v36, %v2713_v38  ;;  %v813_v18 = vmul.f32 %v735_v58, %v2715_v39 }
 0x1b0   : > { %v768_v15 = vmul.f32 0.125, %v766_v6  ;;  %v799_v17 = vmul.f32 0.125, %v797_v13  ;;  %v2852_v20 = vmul.f32 %v2796_v36, %v2724_v45  ;;  %v839_v24 = vmul.f32 %v735_v58, %v2726_v46 }
 0x1b1   : > { %862 = vst [vmem:[#allocation4 + $0x8] sm:$0xf] %v859_v44  ;;  %v798_v2 = vmul.f32 0.125, %v2844_v16  ;;  %v815_v22 = vmul.f32 0.0625, %v813_v18  ;;  %v2860_v19 = vmul.f32 %v2796_v36, %v2735_v51  ;;  %v884_v35 = vmul.f32 %v882_v33, %v2684_v23 }
 0x1b2   : > { %627 = vrot.lane.b32.xlu1 %v622_v30, %s2573_s25  ;;  %v814_v25 = vmul.f32 0.0625, %v2852_v20  ;;  %v841_v28 = vmul.f32 0.0625, %v839_v24  ;;  %v2546_v30 = vld [vmem:[#allocation2 + $0x8] ss:$0 sps:$4 sm:$0xff]   ;;  %v867_v40 = vcombine.low %v2796_v36, %v2796_v36  ;;  %v887_v43 = vcombine.high %v2831_v0, %v2831_v0 }
 0x1b3   : > { %625 = vrot.lane.b32.xlu0 %v621_v34, %s2573_s25  ;;  %v840_v29 = vmul.f32 0.0625, %v2860_v19  ;;  %v901_v34 = vld [vmem:[#allocation2 + $0x8] sm:$0xf]  ;;  %v906_v44 = vcombine.low %v766_v6, %v766_v6  ;;  %v943_v55 = vcombine.low %v2844_v16, %v2844_v16  ;;  %v602_v33 = vmul.f32 %v2775_v21, %v2662_v11 }
 0x1b6   : > { %643 = vrot.lane.b32.xlu1 %v638_v37, %s2574_s26  ;;  %v903_v37 = vmul.f32 %v901_v34, %v2689_v26 }
 0x1b7   : > { %641 = vrot.lane.b32.xlu0 %v637_v42, %s2574_s26 }
 0x1b8   : > { %v907_v42 = vcombine.low %v903_v37, %v903_v37 }
 0x1ba   : > { %673 = vrot.lane.b32.xlu1 %v668_v47, %s2575_s27  ;;  %v938_v47 = vld [vmem:[#allocation2 + $0x8] sm:$0xf] }
 0x1bb   : > { %671 = vrot.lane.b32.xlu0 %v667_v49, %s2575_s27  ;;  %v940_v48 = vmul.f32 %v938_v47, %v2704_v32  ;;  %v921_v49 = vld [vmem:[#allocation2 + $0x8] sm:$0xf]  ;;  %v603_v47 = vmul.f32 0.0625, %v602_v33 }
 0x1bd   : > { %v944_v50 = vcombine.low %v940_v48, %v940_v48 }
 0x1be   : > { %689 = vrot.lane.b32.xlu1 %v684_v52, %s2576_s28  ;;  %v958_v52 = vld [vmem:[#allocation2 + $0x8] sm:$0xf] }
 0x1bf   : > { %687 = vrot.lane.b32.xlu0 %v683_v54, %s2576_s28  ;;  %v960_v53 = vmul.f32 %v958_v52, %v2715_v39  ;;  %v2548_v54 = vld [vmem:[#allocation2 + $0x8] ss:$0 sps:$4 sm:$0xff]  }
 0x1c2   : > { %715 = vrot.lane.b32.xlu1 %v710_v56, %s2577_s12  ;;  %v995_v56 = vld [vmem:[#allocation2 + $0x8] sm:$0xf] }
 0x1c3   : > { %713 = vrot.lane.b32.xlu0 %v709_v57, %s2577_s12  ;;  %v997_v57 = vmul.f32 %v995_v56, %v2726_v46 }
 0x1c6   : > { %742 = vrot.lane.b32.xlu1 %v737_v59, %s2570_s22 }
 0x1c7   : > { %740 = vrot.lane.b32.xlu0 %v736_v60, %s2570_s22 }
 0x1ca   : > { %788 = vrot.lane.b32.xlu1 %v783_v61, %s2571_s23 }
 0x1cb   : > { %786 = vrot.lane.b32.xlu0 %v782_v62, %s2571_s23 }
 0x1ce   : > { %830 = vrot.lane.b32.xlu1 %v737_v59, %s2572_s24 }
 0x1cf   : > { %828 = vrot.lane.b32.xlu0 %v736_v60, %s2572_s24 }
 0x1d2   : > { %758 = vrot.lane.b32.xlu1 %v753_v1, %s2573_s25 }
 0x1d3   : > { %756 = vrot.lane.b32.xlu0 %v752_v4, %s2573_s25 }
 0x1d6   : > { %774 = vrot.lane.b32.xlu1 %v769_v12, %s2574_s26 }
 0x1d7   : > { %772 = vrot.lane.b32.xlu0 %v768_v15, %s2574_s26 }
 0x1da   : > { %804 = vrot.lane.b32.xlu1 %v799_v17, %s2575_s27 }
 0x1db   : > { %802 = vrot.lane.b32.xlu0 %v798_v2, %s2575_s27 }
 0x1de   : > { %820 = vrot.lane.b32.xlu1 %v815_v22, %s2576_s28 }
 0x1df   : > { %818 = vrot.lane.b32.xlu0 %v814_v25, %s2576_s28 }
 0x1e2   : > { %846 = vrot.lane.b32.xlu1 %v841_v28, %s2577_s12 }
 0x1e3   : > { %844 = vrot.lane.b32.xlu0 %v840_v29, %s2577_s12 }
 0x1e6   : > { %871 = vrot.lane.b32.xlu1 %v2796_v36, %s2570_s22 }
 0x1e7   : > { %873 = vrot.lane.b32.xlu0 %v2546_v30, %s2570_s22 }
 0x1ea   : > { %910 = vrot.lane.b32.xlu1 %v766_v6, %s2574_s26 }
 0x1eb   : > { %892 = vrot.lane.b32.xlu0 %v884_v35, %s2573_s25 }
 0x1ee   : > { %869 = vrot.lane.b32.xlu1 %v867_v40, %s2570_s22 }
 0x1ef   : > { %912 = vrot.lane.b32.xlu0 %v907_v42, %s2574_s26 }
 0x1f2   : > { %890 = vrot.lane.b32.xlu1 %v887_v43, %s2573_s25 }
 0x1f6   : > { %908 = vrot.lane.b32.xlu1 %v906_v44, %s2574_s26 }
 0x1fa   : > { %929 = vrot.lane.b32.xlu1 %v921_v49, %s2571_s23 }
 0x1fe   : > { %949 = vrot.lane.b32.xlu1 %v944_v50, %s2575_s27 }
 0x202   : > { %968 = vrot.lane.b32.xlu1 %v960_v53, %s2576_s28 }
 0x206   : > { %986 = vrot.lane.b32.xlu1 %v2548_v54, %s2572_s24 }
 0x20a   : > { %945 = vrot.lane.b32.xlu1 %v943_v55, %s2575_s27 }
 0x20e   : > { %982 = vrot.lane.b32.xlu1 %v867_v40, %s2572_s24 }
 0x212   : > { %1005 = vrot.lane.b32.xlu1 %v997_v57, %s2577_s12 }
 0x218   : > { %v612_v58 = vpop.permute.xlu1 %611 }
 0x219   : > { %v610_v59 = vpop.permute.xlu0 %609  ;;  %v614_v22 = vrot.slane %v612_v58, 4 }
 0x21a   : > { %v613_v24 = vrot.slane %v610_v59, 4 }
 0x21c   : > { %v658_v60 = vpop.permute.xlu1 %657  ;;  %v615_v34 = vsel %vm438_vm15, %v613_v24, %v614_v22 }
 0x21d   : > { %v656_v61 = vpop.permute.xlu0 %655  ;;  %v616_v44 = vsel %vm440_vm0, %v610_v59, %v615_v34  ;;  %v660_v55 = vrot.slane %v658_v60, 4  ;;  %v734_v60 = vmul.f32 0.0625, %v2801_v41 }
 0x21e   : > { %v618_v54 = vadd.f32 %v616_v44, %v603_v47  ;;  %v659_v56 = vrot.slane %v656_v61, 4 }
 0x220   : > { %v2894_v62 = vpop.permute.xlu1 %699 }
 0x221   : > { %v2896_v63 = vpop.permute.xlu0 %697 }
 0x224   : > { %v628_v1 = vpop.permute.xlu1 %627 }
 0x225   : > { %v626_v3 = vpop.permute.xlu0 %625  ;;  %v630_v29 = vrot.slane %v628_v1, 4 }
 0x226   : > { %v629_v30 = vrot.slane %v626_v3, 4 }
 0x228   : > { %v644_v4 = vpop.permute.xlu1 %643  ;;  %v631_v43 = vsel %vm438_vm15, %v629_v30, %v630_v29  ;;  %v661_v29 = vsel %vm438_vm15, %v659_v56, %v660_v55 }
 0x229   : > { %v642_v6 = vpop.permute.xlu0 %641  ;;  %v646_v35 = vrot.slane %v644_v4, 4  ;;  %v632_v53 = vsel %vm467_vm2, %v626_v3, %v631_v43  ;;  %v662_v47 = vsel %vm506_vm4, %v656_v61, %v661_v29 }
 0x22a   : > { %v645_v37 = vrot.slane %v642_v6, 4  ;;  %v634_v4 = vadd.f32 %v632_v53, %v618_v54 }
 0x22c   : > { %v674_v12 = vpop.permute.xlu1 %673  ;;  %v647_v48 = vsel %vm438_vm15, %v645_v37, %v646_v35 }
 0x22d   : > { %v672_v13 = vpop.permute.xlu0 %671  ;;  %v648_v57 = vsel %vm491_vm3, %v642_v6, %v647_v48  ;;  %v676_v58 = vrot.slane %v674_v12, 4 }
 0x22e   : > { %v675_v1 = vrot.slane %v672_v13, 4  ;;  %v650_v30 = vadd.f32 %v648_v57, %v634_v4 }
 0x230   : > { %v690_v15 = vpop.permute.xlu1 %689  ;;  %v677_v3 = vsel %vm438_vm15, %v675_v1, %v676_v58  ;;  %v664_v53 = vadd.f32 %v662_v47, %v650_v30  ;;  %v702_v58 = vrot.slane %v2894_v62, 4 }
 0x231   : > { %v2898_v17 = vpop.permute.xlu0 %687  ;;  %v692_v34 = vrot.slane %v690_v15, 4  ;;  %v678_v41 = vsel %vm530_vm5, %v672_v13, %v677_v3 }
 0x232   : > { %v691_v6 = vrot.slane %v2898_v17, 4 }
 0x234   : > { %v2900_v18 = vpop.permute.xlu1 %715 }
 0x235   : > { %v2902_v2 = vpop.permute.xlu0 %713  ;;  %v718_v29 = vrot.slane %v2900_v18, 4 }
 0x236   : > { %v717_v30 = vrot.slane %v2902_v2, 4 }
 0x238   : > { %v743_v25 = vpop.permute.xlu1 %742 }
 0x239   : > { %v741_v28 = vpop.permute.xlu0 %740  ;;  %v745_v49 = vrot.slane %v743_v25, 4 }
 0x23a   : > { %v744_v50 = vrot.slane %v741_v28, 4 }
 0x23c   : > { %v789_v40 = vpop.permute.xlu1 %788  ;;  %v746_v59 = vsel %vm438_vm15, %v744_v50, %v745_v49 }
 0x23d   : > { %v787_v42 = vpop.permute.xlu0 %786  ;;  %v747_v35 = vsel %vm440_vm0, %v741_v28, %v746_v59  ;;  %v791_v12 = vrot.slane %v789_v40, 4  ;;  %v693_v28 = vsel %vm438_vm15, %v691_v6, %v692_v34  ;;  %v701_v59 = vrot.slane %v2896_v63, 4 }
 0x23e   : > { %v790_v37 = vrot.slane %v787_v42, 4  ;;  %v749_v54 = vadd.f32 %v747_v35, %v734_v60  ;;  %v694_v13 = vsel %vm554_vm6, %v2898_v17, %v693_v28 }
 0x23f   : > { %v703_v17 = vsel %vm438_vm15, %v701_v59, %v702_v58 }
 0x240   : > { %v2910_v52 = vpop.permute.xlu1 %830  ;;  %v792_v55 = vsel %vm438_vm15, %v790_v37, %v791_v12 }
 0x241   : > { %v2913_v21 = vpop.permute.xlu0 %828  ;;  %v833_v62 = vrot.slane %v2910_v52, 4 }
 0x242   : > { %v832_v3 = vrot.slane %v2913_v21, 4 }
 0x244   : > { %v759_v22 = vpop.permute.xlu1 %758 }
 0x245   : > { %v761_v24 = vrot.slane %v759_v22, 4  ;;  %v757_v25 = vpop.permute.xlu0 %756  ;;  %v680_v22 = vadd.f32 %v678_v41, %v664_v53 }
 0x246   : > { %v760_v33 = vrot.slane %v757_v25, 4 }
 0x248   : > { %v762_v43 = vsel %vm438_vm15, %v760_v33, %v761_v24  ;;  %v775_v44 = vpop.permute.xlu1 %774  ;;  %v793_v33 = vsel %vm506_vm4, %v787_v42, %v792_v55  ;;  %v834_v42 = vsel %vm438_vm15, %v832_v3, %v833_v62 }
 0x249   : > { %v763_v48 = vsel %vm467_vm2, %v757_v25, %v762_v43  ;;  %v777_v49 = vrot.slane %v775_v44, 4  ;;  %v773_v50 = vpop.permute.xlu0 %772  ;;  %v696_v43 = vadd.f32 %v694_v13, %v680_v22  ;;  %v719_v44 = vsel %vm438_vm15, %v717_v30, %v718_v29 }
 0x24a   : > { %v776_v15 = vrot.slane %v773_v50, 4  ;;  %v765_v40 = vadd.f32 %v763_v48, %v749_v54  ;;  %v720_v55 = vsel %vm588_vm1, %v2902_v2, %v719_v44  ;;  %v855_v22 = vstv %s403_s13 }
 0x24c   : > { %v778_v56 = vsel %vm438_vm15, %v776_v15, %v777_v49  ;;  %v805_v57 = vpop.permute.xlu1 %804  ;;  %v704_v49 = vsel %vm565_vm7, %v2896_v63, %v703_v17  ;;  %v963_v17 = vcombine.high %v2852_v20, %v2852_v20 }
 0x24d   : > { %v779_v61 = vsel %vm491_vm3, %v773_v50, %v778_v56  ;;  %v807_v1 = vrot.slane %v805_v57, 4  ;;  %v803_v4 = vpop.permute.xlu0 %802  ;;  %v706_v15 = vadd.f32 %v704_v49, %v696_v43 }
 0x24e   : > { %v781_v24 = vadd.f32 %v779_v61, %v765_v40  ;;  %v806_v25 = vrot.slane %v803_v4, 4  ;;  %v835_v40 = vsel %vm565_vm7, %v2913_v21, %v834_v42 }
 0x250   : > { %v795_v34 = vadd.f32 %v793_v33, %v781_v24  ;;  %v808_v60 = vsel %vm438_vm15, %v806_v25, %v807_v1  ;;  %v821_v35 = vpop.permute.xlu1 %820  ;;  %v722_v1 = vadd.f32 %v720_v55, %v706_v15 }
 0x251   : > { %v809_v6 = vsel %vm530_vm5, %v803_v4, %v808_v60  ;;  %v823_v12 = vrot.slane %v821_v35, 4  ;;  %v819_v37 = vpop.permute.xlu0 %818 }
 0x252   : > { %v822_v18 = vrot.slane %v819_v37, 4  ;;  %v811_v52 = vadd.f32 %v809_v6, %v795_v34 }
 0x254   : > { %v824_v47 = vsel %vm438_vm15, %v822_v18, %v823_v12  ;;  %v847_v48 = vpop.permute.xlu1 %846 }
 0x255   : > { %v825_v50 = vsel %vm554_vm6, %v819_v37, %v824_v47  ;;  %v849_v53 = vrot.slane %v847_v48, 4  ;;  %v845_v54 = vpop.permute.xlu0 %844 }
 0x256   : > { %v827_v41 = vadd.f32 %v825_v50, %v811_v52  ;;  %v848_v28 = vrot.slane %v845_v54, 4 }
 0x258   : > { %v837_v56 = vadd.f32 %v835_v40, %v827_v41  ;;  %v850_v57 = vsel %vm438_vm15, %v848_v28, %v849_v53  ;;  %v872_v58 = vpop.permute.xlu1 %871 }
 0x259   : > { %v851_v61 = vsel %vm588_vm1, %v845_v54, %v850_v57  ;;  %v874_v63 = vpop.permute.xlu0 %873 }
 0x25a   : > { %v853_v4 = vadd.f32 %v851_v61, %v837_v56  ;;  %v876_v59 = vsel %vm440_vm0, %v872_v58, %v874_v63 }
 0x25b   : > { %880 = vst [vmem:[#allocation4 + $0x8] sm:$0xf0] %v876_v59 }
 0x25c   : > { %v854_v24 = vsub.f32 %v722_v1, %v853_v4  ;;  %v911_v25 = vpop.permute.xlu1 %910 }
 0x25d   : > { %v893_v13 = vpop.permute.xlu0 %892 }
 0x25e   : > { %v856_v2 = vmul.f32 %v855_v22, %v854_v24 }
 0x260   : > { %v870_v29 = vpop.permute.xlu1 %869  ;;  %v2956_v21 = vsub.f32 %v2646_v5, %v856_v2  ;;  %v924_v5 = vcombine.high %v2796_v36, %v2796_v36 }
 0x261   : > { %v875_v30 = vsel %vm440_vm0, %v870_v29, %v872_v58  ;;  %v913_v33 = vpop.permute.xlu0 %912 }
 0x262   : > { %879 = vst [vmem:[#allocation4] sm:$0xf0] %v875_v30  ;;  %v915_v62 = vsel %vm491_vm3, %v911_v25, %v913_v33  ;;  %1014 = vrot.lane.b32.xlu0 %v2956_v21, %s2564_s16  ;;  %v1182_v6 = vld [vmem:[#allocation4 + $0x8] sm:$0xff] }
 0x263   : > { %919 = vst [vmem:[#allocation4 + $0x18] sm:$0xf0] %v915_v62 }
 0x264   : > { %v891_v3 = vpop.permute.xlu1 %890 }
 0x265   : > { %v895_v34 = vsel %vm467_vm2, %v891_v3, %v893_v13 }
 0x266   : > { %899 = vst [vmem:[#allocation4 + $0x18] sm:$0xf] %v895_v34  ;;  %888 = vrot.lane.b32.xlu0 %v2831_v0, %s2573_s25  ;;  %v1000_v0 = vcombine.high %v2860_v19, %v2860_v19 }
 0x268   : > { %v909_v60 = vpop.permute.xlu1 %908 }
 0x269   : > { %v914_v35 = vsel %vm491_vm3, %v909_v60, %v911_v25  ;;  %v1181_v55 = vld [vmem:[#allocation4] sm:$0xff] }
 0x26a   : > { %918 = vst [vmem:[#allocation4 + $0x10] sm:$0xf0] %v914_v35  ;;  %927 = vrot.lane.b32.xlu0 %v924_v5, %s2571_s23 }
 0x26d   : > { %v1184_v12 = vld [vmem:[#allocation4 + $0x18] sm:$0xff] }
 0x26e   : > { %947 = vrot.lane.b32.xlu0 %v2844_v16, %s2575_s27  ;;  %v2407_v37 = vpack.c.bf16 %v1184_v12, %v1182_v6  ;;  %v930_v16 = vpop.permute.xlu1 %929 }
 0x270   : > { %2408 = vmatprep.subr.bf16.mxu0 %v2407_v37 }
 0x272   : > { %966 = vrot.lane.b32.xlu0 %v963_v17, %s2576_s28  ;;  %v950_v43 = vpop.permute.xlu1 %949 }
 0x276   : > { %984 = vrot.lane.b32.xlu0 %v2796_v36, %s2572_s24  ;;  %v969_v18 = vpop.permute.xlu1 %968 }
 0x27a   : > { %925 = vrot.lane.b32.xlu0 %v2796_v36, %s2571_s23  ;;  %v987_v47 = vpop.permute.xlu1 %986 }
 0x27e   : > { %964 = vrot.lane.b32.xlu0 %v2852_v20, %s2576_s28  ;;  %v946_v54 = vpop.permute.xlu1 %945 }
 0x282   : > { %1003 = vrot.lane.b32.xlu0 %v1000_v0, %s2577_s12  ;;  %v983_v59 = vpop.permute.xlu1 %982 }
 0x286   : > { %1001 = vrot.lane.b32.xlu0 %v2860_v19, %s2577_s12  ;;  %v1006_v6 = vpop.permute.xlu1 %1005 }
 0x2d4   : > { %v1015_v44 = vpop.permute.xlu0 %1014 }
 0x2d5   : > { %v1016_v42 = vrot.slane %v1015_v44, 4 }
 0x2d7   : > { %v1017_v52 = vsel %vm410_vm8, %v1016_v42, %v1015_v44  ;;  %1021 = vst.msk [vmem:[#allocation2 + $0x8] sm:$0xf] %vm418_vm9, %v1016_v42  ;;  %vm1211_vm9 = vcmask 588800  }
 0x2d8   : > { %1020 = vst.msk [vmem:[#allocation2] sm:$0xff] %vm2673_vm10, %v1017_v52  ;;  %v889_v36 = vpop.permute.xlu0 %888  ;;  %vm1319_vm10 = vcmask 1047688  }
 0x2d9   : > { %v894_v20 = vsel %vm467_vm2, %v889_v36, %v891_v3 }
 0x2da   : > { %898 = vst [vmem:[#allocation4 + $0x10] sm:$0xf] %v894_v20 }
 0x2dc   : > { %v928_v48 = vpop.permute.xlu0 %927 }
 0x2dd   : > { %v932_v19 = vsel %vm506_vm4, %v928_v48, %v930_v16 }
 0x2de   : > { %936 = vst [vmem:[#allocation4 + $0x28] sm:$0xf] %v932_v19  ;;  %v1143_v49 = vld [vmem:[#allocation2 + $0x8] sm:$0xf] }
 0x2df   : > { %v1030_v50 = vld [vmem:[#allocation2 + $0x8] sm:$0xf]  ;;  %1151 = vrot.lane.b32.xlu0 %v1143_v49, %s2572_s24  ;;  %v2996_v56 = vld [vmem:[#allocation2] sm:$0xff] }
 0x2e0   : > { %v1067_v53 = vld [vmem:[#allocation2 + $0x8] sm:$0xf]  ;;  %1038 = vrot.lane.b32.xlu1 %v1030_v50, %s2570_s22  ;;  %v948_v15 = vpop.permute.xlu0 %947  ;;  %v1033_v29 = vcombine.high %v2996_v56, %v2996_v56  ;;  %v1068_v33 = vmul.f32 %v2996_v56, %v2702_v31  ;;  %v1105_v62 = vmul.f32 %v2996_v56, %v2713_v38  ;;  %v1048_v3 = vmul.f32 %v2996_v56, %v2693_v27 }
 0x2e1   : > { %v951_v14 = vsel %vm530_vm5, %v946_v54, %v948_v15  ;;  %v952_v41 = vsel %vm530_vm5, %v948_v15, %v950_v43  ;;  %v1069_v28 = vmul.f32 %v1067_v53, %v2689_v26  ;;  %v1183_v40 = vld [vmem:[#allocation4 + $0x10] sm:$0xff]  ;;  %v2551_v63 = vld [vmem:[#allocation2 + $0x8] ss:$0 sps:$4 sm:$0xff]   ;;  %v1023_v26 = vmul.f32 %v2996_v56, %v2662_v11 }
 0x2e2   : > { %955 = vst [vmem:[#allocation4 + $0x20] sm:$0xf0] %v951_v14  ;;  %956 = vst [vmem:[#allocation4 + $0x28] sm:$0xf0] %v952_v41  ;;  %v2409_v57 = vpack.c.bf16 %v1183_v40, %v1181_v55  ;;  %v1104_v1 = vld [vmem:[#allocation2 + $0x8] sm:$0xf]  ;;  %v1124_v11 = vmul.f32 %v2996_v56, %v2724_v45  ;;  %v1089_v37 = vcombine.low %v2996_v56, %v2996_v56 }
 0x2e3   : > { %1077 = vrot.lane.b32.xlu0 %v1069_v28, %s2574_s26  ;;  %1028 = vst [vmem:[#allocation4 + $0x48] sm:$0xf0] %v1023_v26  ;;  %v1025_v4 = vcombine.low %v1023_v26, %v1023_v26  ;;  %v1106_v13 = vmul.f32 %v1104_v1, %v2704_v32  ;;  %v1047_v35 = vld [vmem:[#allocation2 + $0x8] sm:$0xf]  ;;  %v1161_v19 = vmul.f32 %v2996_v56, %v2735_v51  ;;  %v2578_v51 = vmov 0  }
 0x2e4   : > { %1034 = vrot.lane.b32.xlu1 %v2996_v56, %s2570_s22  ;;  %2410 = vmatpush1.bf16.msra.mxu0 %v2409_v57  ;;  %v967_v58 = vpop.permute.xlu0 %966  ;;  %v1123_v31 = vld [vmem:[#allocation2 + $0x8] sm:$0xf]  ;;  %v1049_v27 = vmul.f32 %v1047_v35, %v2684_v23  ;;  %v1052_v23 = vcombine.low %v1048_v3, %v1048_v3  ;;  %v1128_v20 = vcombine.low %v1124_v11, %v1124_v11 }
 0x2e5   : > { %v971_v61 = vsel %vm554_vm6, %v967_v58, %v969_v18  ;;  %1027 = vst [vmem:[#allocation4 + $0x40] sm:$0xf0] %v1025_v4  ;;  %v1125_v17 = vmul.f32 %v1123_v31, %v2715_v39  ;;  %v1072_v39 = vcombine.high %v1068_v33, %v1068_v33  ;;  %v1160_v36 = vld [vmem:[#allocation2 + $0x8] sm:$0xf]  ;;  %v1165_v50 = vcombine.low %v1161_v19, %v1161_v19 }
 0x2e6   : > { %975 = vst [vmem:[#allocation4 + $0x38] sm:$0xf] %v971_v61  ;;  %v1053_v43 = vcombine.low %v1049_v27, %v1049_v27  ;;  %v1200_v53 = vld [vmem:[%s3588_s4 + $0x8] sm:$0xff]  ;;  %2519 = vset.pattern.permute.xlu1 %v2578_v51  ;;  %2520 = vset.pattern.permute.xlu0 %v2578_v51  ;;  %v3058_v54 = vpack.i.bf16 %v2656_v9, %v2652_v7 }
 0x2e7   : > { %1095 = vrot.lane.b32.xlu0 %v2551_v63, %s2571_s23  ;;  %v1129_v18 = vcombine.low %v1125_v17, %v1125_v17  ;;  %v3062_v15 = vpack.i.bf16 %v2658_v10, %v2654_v8 }
 0x2e8   : > { %1093 = vrot.lane.b32.xlu1 %v2996_v56, %s2571_s23  ;;  %v985_v22 = vpop.permute.xlu0 %984 }
 0x2e9   : > { %v988_v24 = vsel %vm565_vm7, %v983_v59, %v985_v22  ;;  %v989_v25 = vsel %vm565_vm7, %v985_v22, %v987_v47  ;;  %v1186_v34 = vld [vmem:[#allocation4 + $0x28] sm:$0xff]  ;;  %v1109_v47 = vcombine.high %v1105_v62, %v1105_v62 }
 0x2ea   : > { %992 = vst [vmem:[#allocation4 + $0x30] sm:$0xf0] %v988_v24  ;;  %993 = vst [vmem:[#allocation4 + $0x38] sm:$0xf0] %v989_v25 }
 0x2eb   : > { %1114 = vrot.lane.b32.xlu0 %v1106_v13, %s2575_s27 }
 0x2ec   : > { %1132 = vrot.lane.b32.xlu1 %v1124_v11, %s2576_s28  ;;  %v926_v2 = vpop.permute.xlu0 %925 }
 0x2ed   : > { %v931_v30 = vsel %vm506_vm4, %v926_v2, %v928_v48  ;;  %v1162_v48 = vmul.f32 %v1160_v36, %v2726_v46  ;;  %v1199_v46 = vld [vmem:[%s3588_s4] sm:$0xff] }
 0x2ee   : > { %935 = vst [vmem:[#allocation4 + $0x20] sm:$0xf] %v931_v30 }
 0x2ef   : > { %1036 = vrot.lane.b32.xlu0 %v1033_v29, %s2570_s22  ;;  %v1166_v49 = vcombine.low %v1162_v48, %v1162_v48 }
 0x2f0   : > { %1073 = vrot.lane.b32.xlu1 %v1068_v33, %s2574_s26  ;;  %v965_v32 = vpop.permute.xlu0 %964 }
 0x2f1   : > { %v970_v45 = vsel %vm554_vm6, %v965_v32, %v967_v58  ;;  %v1188_v60 = vld [vmem:[#allocation4 + $0x38] sm:$0xff] }
 0x2f2   : > { %974 = vst [vmem:[#allocation4 + $0x30] sm:$0xf] %v970_v45  ;;  %v2411_v5 = vpack.c.bf16 %v1188_v60, %v1186_v34 }
 0x2f3   : > { %1056 = vrot.lane.b32.xlu0 %v1048_v3, %s2573_s25 }
 0x2f4   : > { %1110 = vrot.lane.b32.xlu1 %v1105_v62, %s2575_s27  ;;  %2412 = vmatprep.subr.bf16.mxu0 %v2411_v5  ;;  %v1004_v12 = vpop.permute.xlu0 %1003 }
 0x2f5   : > { %v1008_v38 = vsel %vm588_vm1, %v1004_v12, %v1006_v6  ;;  %v1185_v44 = vld [vmem:[#allocation4 + $0x20] sm:$0xff] }
 0x2f6   : > { %1012 = vst [vmem:[#allocation4 + $0x48] sm:$0xf] %v1008_v38 }
 0x2f7   : > { %1091 = vrot.lane.b32.xlu0 %v1089_v37, %s2571_s23 }
 0x2f8   : > { %1149 = vrot.lane.b32.xlu1 %v1033_v29, %s2572_s24  ;;  %v1002_v0 = vpop.permute.xlu0 %1001 }
 0x2f9   : > { %v1007_v16 = vsel %vm588_vm1, %v1002_v0, %v1004_v12  ;;  %v1187_v42 = vld [vmem:[#allocation4 + $0x30] sm:$0xff] }
 0x2fa   : > { %1011 = vst [vmem:[#allocation4 + $0x40] sm:$0xf] %v1007_v16  ;;  %v2413_v52 = vpack.c.bf16 %v1187_v42, %v1185_v44 }
 0x2fb   : > { %1134 = vrot.lane.b32.xlu0 %v1129_v18, %s2576_s28 }
 0x2fc   : > { %1058 = vrot.lane.b32.xlu1 %v1053_v43, %s2573_s25  ;;  %2414 = vmatpush1.bf16.msra.mxu0 %v2413_v52 }
 0x2fd   : > { %v1190_v31 = vld [vmem:[#allocation4 + $0x48] sm:$0xff] }
 0x2ff   : > { %1054 = vrot.lane.b32.xlu0 %v1052_v23, %s2573_s25 }
 0x300   : > { %1075 = vrot.lane.b32.xlu1 %v1072_v39, %s2574_s26 }
 0x301   : > { %v1189_v17 = vld [vmem:[#allocation4 + $0x40] sm:$0xff] }
 0x303   : > { %1130 = vrot.lane.b32.xlu0 %v1128_v20, %s2576_s28 }
 0x304   : > { %1112 = vrot.lane.b32.xlu1 %v1109_v47, %s2575_s27 }
 0x307   : > { %1171 = vrot.lane.b32.xlu0 %v1166_v49, %s2577_s12 }
 0x308   : > { %1169 = vrot.lane.b32.xlu1 %v1161_v19, %s2577_s12  ;;  %v1179_v19 = vld [vmem:[%s3587_s3] sm:$0xff] }
 0x30b   : > { %1167 = vrot.lane.b32.xlu0 %v1165_v50, %s2577_s12  ;;  %v2554_v50 = vld [vmem:[#allocation3] sm:$0xff] }
 0x30c   : > { %1147 = vrot.lane.b32.xlu1 %v2996_v56, %s2572_s24 }
 0x30f   : > { %1208 = vperm.xlu0 %2520, %v1200_v53  }
 0x310   : > { %1203 = vperm.xlu1 %2519, %v1199_v46   ;;  %v1180_v46 = vld [vmem:[%s3587_s3 + $0x8] sm:$0xff] }
 0x313   : > { %2522 = vrot.lane.b32.xlu0 %v3062_v15, %s2566_s18 }
 0x314   : > { %2527 = vrot.lane.b32.xlu1 %v3058_v54, %s2565_s17 }
 0x317   : > { %2532 = vrot.lane.b32.xlu0 %v3062_v15, %s2567_s19 }
 0x318   : > { %2537 = vrot.lane.b32.xlu1 %v3058_v54, %s2568_s20 }
 0x31b   : > { %2542 = vrot.lane.b32.xlu0 %v3062_v15, %s2569_s21 }
 0x351   : > { %v1152_v41 = vpop.permute.xlu0 %1151 }
 0x352   : > { %v1039_v14 = vpop.permute.xlu1 %1038 }
 0x355   : > { %v1078_v55 = vpop.permute.xlu0 %1077 }
 0x356   : > { %v1035_v28 = vpop.permute.xlu1 %1034 }
 0x359   : > { %v1096_v56 = vpop.permute.xlu0 %1095 }
 0x35a   : > { %v1094_v40 = vpop.permute.xlu1 %1093 }
 0x35b   : > { %v1098_v57 = vsel %vm506_vm4, %v1094_v40, %v1096_v56 }
 0x35c   : > { %1102 = vst [vmem:[#allocation4 + $0x68] sm:$0xf0] %v1098_v57 }
 0x35d   : > { %v1115_v61 = vpop.permute.xlu0 %1114 }
 0x35e   : > { %v1133_v58 = vpop.permute.xlu1 %1132 }
 0x361   : > { %v1037_v8 = vpop.permute.xlu0 %1036 }
 0x362   : > { %v1074_v63 = vpop.permute.xlu1 %1073  ;;  %v1040_v10 = vsel %vm440_vm0, %v1035_v28, %v1037_v8  ;;  %v1041_v26 = vsel %vm440_vm0, %v1037_v8, %v1039_v14 }
 0x363   : > { %1044 = vst [vmem:[#allocation4 + $0x50] sm:$0xf] %v1040_v10  ;;  %1045 = vst [vmem:[#allocation4 + $0x58] sm:$0xf] %v1041_v26 }
 0x365   : > { %v1057_v4 = vpop.permute.xlu0 %1056 }
 0x366   : > { %v1111_v1 = vpop.permute.xlu1 %1110 }
 0x369   : > { %v1092_v22 = vpop.permute.xlu0 %1091 }
 0x36a   : > { %v1150_v59 = vpop.permute.xlu1 %1149  ;;  %v1097_v25 = vsel %vm506_vm4, %v1092_v22, %v1094_v40 }
 0x36b   : > { %v1154_v24 = vsel %vm565_vm7, %v1150_v59, %v1152_v41  ;;  %1101 = vst [vmem:[#allocation4 + $0x60] sm:$0xf0] %v1097_v25 }
 0x36c   : > { %1158 = vst [vmem:[#allocation4 + $0x88] sm:$0xf] %v1154_v24 }
 0x36d   : > { %v1135_v11 = vpop.permute.xlu0 %1134 }
 0x36e   : > { %v1059_v13 = vpop.permute.xlu1 %1058  ;;  %v1137_v29 = vsel %vm554_vm6, %v1133_v58, %v1135_v11 }
 0x36f   : > { %v1061_v2 = vsel %vm467_vm2, %v1057_v4, %v1059_v13  ;;  %1141 = vst [vmem:[#allocation4 + $0x78] sm:$0xf0] %v1137_v29 }
 0x370   : > { %1065 = vst [vmem:[#allocation4 + $0x58] sm:$0xf0] %v1061_v2 }
 0x371   : > { %v1055_v33 = vpop.permute.xlu0 %1054 }
 0x372   : > { %v1076_v30 = vpop.permute.xlu1 %1075  ;;  %v1060_v62 = vsel %vm467_vm2, %v1055_v33, %v1057_v4 }
 0x373   : > { %v1079_v32 = vsel %vm491_vm3, %v1074_v63, %v1076_v30  ;;  %v1080_v45 = vsel %vm491_vm3, %v1076_v30, %v1078_v55  ;;  %1064 = vst [vmem:[#allocation4 + $0x50] sm:$0xf0] %v1060_v62 }
 0x374   : > { %1083 = vst [vmem:[#allocation4 + $0x60] sm:$0xf] %v1079_v32  ;;  %1084 = vst [vmem:[#allocation4 + $0x68] sm:$0xf] %v1080_v45 }
 0x375   : > { %v1131_v34 = vpop.permute.xlu0 %1130 }
 0x376   : > { %v1113_v3 = vpop.permute.xlu1 %1112  ;;  %v1136_v35 = vsel %vm554_vm6, %v1131_v34, %v1133_v58 }
 0x377   : > { %v1116_v60 = vsel %vm530_vm5, %v1111_v1, %v1113_v3  ;;  %v1117_v5 = vsel %vm530_vm5, %v1113_v3, %v1115_v61  ;;  %v1192_v6 = vld [vmem:[#allocation4 + $0x58] sm:$0xff]  ;;  %1140 = vst [vmem:[#allocation4 + $0x70] sm:$0xf0] %v1136_v35 }
 0x378   : > { %1120 = vst [vmem:[#allocation4 + $0x70] sm:$0xf] %v1116_v60  ;;  %1121 = vst [vmem:[#allocation4 + $0x78] sm:$0xf] %v1117_v5  ;;  %v2415_v12 = vpack.c.bf16 %v1192_v6, %v1190_v31 }
 0x379   : > { %v1172_v38 = vpop.permute.xlu0 %1171 }
 0x37a   : > { %v1170_v37 = vpop.permute.xlu1 %1169  ;;  %2416 = vmatprep.subr.bf16.mxu0 %v2415_v12  ;;  %v1191_v0 = vld [vmem:[#allocation4 + $0x50] sm:$0xff] }
 0x37b   : > { %v1174_v27 = vsel %vm588_vm1, %v1170_v37, %v1172_v38  ;;  %v2417_v16 = vpack.c.bf16 %v1191_v0, %v1189_v17  ;;  %v1194_v44 = vld [vmem:[#allocation4 + $0x68] sm:$0xff]  ;;  %v1193_v39 = vld [vmem:[#allocation4 + $0x60] sm:$0xff] }
 0x37c   : > { %1178 = vst [vmem:[#allocation4 + $0x88] sm:$0xf0] %v1174_v27 }
 0x37d   : > { %2418 = vmatpush1.bf16.msra.mxu0 %v2417_v16  ;;  %v1168_v18 = vpop.permute.xlu0 %1167 }
 0x37e   : > { %v1148_v43 = vpop.permute.xlu1 %1147  ;;  %v1173_v52 = vsel %vm588_vm1, %v1168_v18, %v1170_v37 }
 0x37f   : > { %v1153_v42 = vsel %vm565_vm7, %v1148_v43, %v1150_v59  ;;  %v1196_v23 = vld [vmem:[#allocation4 + $0x78] sm:$0xff]  ;;  %v1195_v36 = vld [vmem:[#allocation4 + $0x70] sm:$0xff]  ;;  %1177 = vst [vmem:[#allocation4 + $0x80] sm:$0xf0] %v1173_v52 }
 0x380   : > { %1157 = vst [vmem:[#allocation4 + $0x80] sm:$0xf] %v1153_v42  ;;  %v2419_v20 = vpack.c.bf16 %v1196_v23, %v1194_v44  ;;  %v2421_v47 = vpack.c.bf16 %v1195_v36, %v1193_v39 }
 0x382   : > { %2420 = vmatprep.subr.bf16.mxu0 %v2419_v20 }
 0x383   : > { %2422 = vmatpush1.bf16.msra.mxu0 %v2421_v47  ;;  %v1198_v48 = vld [vmem:[#allocation4 + $0x88] sm:$0xff] }
 0x384   : > { %1234 = vmatprep.subr.mxu0 %v1198_v48 }
 0x387   : > { %v1197_v49 = vld [vmem:[#allocation4 + $0x80] sm:$0xff] }
 0x388   : > { %1235 = vmatpush1.msra.mxu0 %v1197_v49 }
 0x389   : > { %2397 = vmatmul.mubr.msk.f32.vlgmr.msra.gmra.mrb[0].mxu0 %vm1211_vm9, %v1179_v19 }
 0x38a   : > { %1288 = vmatprep.mubr.f32.mxu0 %v2554_v50 }
 0x38d   : > { %2398 = vmatmul.mubr.msk.f32.gmra.mrb[2].mxu0 %vm1211_vm9, %v1180_v46 }
 0x38e   : > { %v1209_v28 = vpop.permute.xlu0 %1208 }
 0x38f   : > { %v1204_v53 = vpop.permute.xlu1 %1203 }
 0x392   : > { %v2523_v15 = vpop.permute.xlu0 %2522 }
 0x393   : > { %v2528_v10 = vpop.permute.xlu1 %2527  ;;  %v3132_v60 = vunpack.i.l.bf16 %v2523_v15  ;;  %v3142_v31 = vunpack.i.h.bf16 %v2523_v15 }
 0x394   : > { %v3140_v35 = vunpack.i.l.bf16 %v2528_v10  ;;  %v3151_v37 = vunpack.i.h.bf16 %v2528_v10 }
 0x395   : > { %v3183_v52 = vsel %vm450_vm11, %v3132_v60, %v3142_v31  ;;  %vm3597_vm11 = vcmask 277504  }
 0x396   : > { %v2533_v26 = vpop.permute.xlu0 %2532  ;;  %v3197_v39 = vsel %vm474_vm12, %v3140_v35, %v3151_v37 }
 0x397   : > { %v2538_v1 = vpop.permute.xlu1 %2537  ;;  %v3157_v27 = vunpack.i.h.bf16 %v2533_v26  ;;  %v3159_v17 = vunpack.i.l.bf16 %v2533_v26 }
 0x398   : > { %v3168_v43 = vunpack.i.h.bf16 %v2538_v1  ;;  %v3170_v18 = vunpack.i.l.bf16 %v2538_v1 }
 0x399   : > { %v3204_v47 = vsel %vm513_vm13, %v3159_v17, %v3157_v27 }
 0x39a   : > { %v3100_v4 = vpop.permute.xlu0 %2542  ;;  %v3215_v19 = vsel %vm537_vm14, %v3170_v18, %v3168_v43 }
 0x45c   : > { %v1284_v51 = vpop.f32.mrb[0].mxu0 }
 0x45d   : > { %v1285_v14 = vadd.f32 %v1284_v51, %v1204_v53  ;;  %v1286_v41 = vpop.f32.mrb[1].mxu0 }
 0x45e   : > { %v1287_v40 = vadd.f32 %v1286_v41, %v1204_v53 }
 0x45f   : > { %v1295_v55 = vmax.f32 %v1285_v14, 0.0 }
 0x460   : > { %v1290_v56 = vpop.f32.mrb[2].mxu0  ;;  %v1296_v54 = vmax.f32 %v1287_v40, 0.0 }
 0x461   : > { %v1291_v57 = vadd.f32 %v1290_v56, %v1209_v28  ;;  %1303 = vrot.lane.b32.xlu1 %v1295_v55, %s2564_s16  ;;  %v1292_v58 = vpop.f32.mrb[3].mxu0 }
 0x462   : > { %v1293_v61 = vadd.f32 %v1292_v58, %v1209_v28  ;;  %v3258_v58 = vunpack.i.l.bf16 %v3100_v4 }
 0x463   : > { %v1297_v63 = vmax.f32 %v1291_v57, 0.0  ;;  %v3255_v57 = vunpack.i.h.bf16 %v3100_v4  ;;  %v1736_v4 = vld [vmem:[%s3590_s6] sm:$0xff] }
 0x464   : > { %v1298_v8 = vmax.f32 %v1293_v61, 0.0 }
 0x465   : > { %1305 = vrot.lane.b32.xlu1 %v1296_v54, %s2564_s16  ;;  %1307 = vrot.lane.b32.xlu0 %v1297_v63, %s2564_s16  ;;  %v3268_v63 = vsel %vm3597_vm11, %v3258_v58, %v3255_v57 }
 0x469   : > { %1309 = vrot.lane.b32.xlu1 %v1298_v8, %s2564_s16 }
 0x4d3   : > { %v1304_v59 = vpop.permute.xlu1 %1303 }
 0x4d4   : > { %1320 = vst.msk [vmem:[#allocation3] sm:$0xff] %vm1319_vm10, %v1304_v59 }
 0x4d7   : > { %v1306_v22 = vpop.permute.xlu1 %1305  ;;  %v1308_v24 = vpop.permute.xlu0 %1307 }
 0x4d8   : > { %1322 = vst.msk [vmem:[#allocation3 + $0x10] sm:$0xff] %vm410_vm8, %v1306_v22  ;;  %v3106_v25 = vsel %vm410_vm8, %v1304_v59, %v1306_v22  ;;  %v1697_v22 = vld [vmem:[%s3589_s5 + $0x8] sm:$0xff] }
 0x4d9   : > { %1323 = vst.msk [vmem:[#allocation3 + $0x18] sm:$0xff] %vm1319_vm10, %v1308_v24  ;;  %v1331_v29 = vmul.f32 %v2656_v9, %v3106_v25  ;;  %v1389_v23 = vmul.f32 %v3183_v52, %v3106_v25  ;;  %v1439_v36 = vmul.f32 %v3197_v39, %v3106_v25  ;;  %v1525_v48 = vmul.f32 %v3204_v47, %v3106_v25 }
 0x4da   : > { %v1575_v49 = vmul.f32 %v3215_v19, %v3106_v25  ;;  %v1661_v8 = vmul.f32 %v3268_v63, %v3106_v25  ;;  %2399 = vmatprep.mubr.msk.f32.mxu1 %vm474_vm12, %v1697_v22 }
 0x4db   : > { %v3108_v13 = vld [vmem:[#allocation3] sm:$0xff]  ;;  %v1310_v11 = vpop.permute.xlu1 %1309 }
 0x4dc   : > { %v3111_v2 = vsel %vm410_vm8, %v1308_v24, %v1310_v11  ;;  %1325 = vst.msk [vmem:[#allocation3 + $0x28] sm:$0xff] %vm410_vm8, %v1310_v11  ;;  %1350 = vrot.lane.b32.xlu1 %v3108_v13, %s2570_s22  ;;  %v1330_v62 = vmul.f32 %v2652_v7, %v3108_v13  ;;  %v1388_v5 = vmul.f32 %v3132_v60, %v3108_v13  ;;  %v1737_v24 = vld [vmem:[%s3590_s6 + $0x8] sm:$0xff] }
 0x4dd   : > { %v1333_v30 = vmul.f32 %v2656_v9, %v3111_v2  ;;  %v1438_v12 = vmul.f32 %v3140_v35, %v3108_v13  ;;  %v1524_v16 = vmul.f32 %v3159_v17, %v3108_v13  ;;  %v1574_v42 = vmul.f32 %v3170_v18, %v3108_v13 }
 0x4de   : > { %v1392_v14 = vmul.f32 %v3183_v52, %v3111_v2  ;;  %v1442_v28 = vmul.f32 %v3197_v39, %v3111_v2  ;;  %v1528_v56 = vmul.f32 %v3204_v47, %v3111_v2  ;;  %v1578_v54 = vmul.f32 %v3215_v19, %v3111_v2 }
 0x4df   : > { %v3122_v32 = vld [vmem:[#allocation3 + $0x10] sm:$0xff]  ;;  %v2423_v45 = vpack.c.bf16 %v1333_v30, %v1331_v29  ;;  %v1664_v10 = vmul.f32 %v3268_v63, %v3111_v2  ;;  %v1660_v1 = vmul.f32 %v3258_v58, %v3108_v13 }
 0x4e0   : > { %v3120_v33 = vld [vmem:[#allocation3 + $0x18] sm:$0xff]  ;;  %1486 = vrot.lane.b32.xlu1 %v3108_v13, %s2571_s23  ;;  %1354 = vrot.lane.b32.xlu0 %v3122_v32, %s2570_s22  ;;  %v1390_v6 = vmul.f32 %v3142_v31, %v3122_v32  ;;  %v1440_v38 = vmul.f32 %v3151_v37, %v3122_v32  ;;  %v1526_v0 = vmul.f32 %v3157_v27, %v3122_v32 }
 0x4e1   : > { %v1332_v3 = vmul.f32 %v2652_v7, %v3120_v33  ;;  %2424 = vmatprep.subr.bf16.mxu1 %v2423_v45  ;;  %v1576_v44 = vmul.f32 %v3168_v43, %v3122_v32  ;;  %v1391_v50 = vmul.f32 %v3132_v60, %v3120_v33  ;;  %v1441_v46 = vmul.f32 %v3140_v35, %v3120_v33 }
 0x4e2   : > { %v1527_v53 = vmul.f32 %v3159_v17, %v3120_v33  ;;  %v1577_v51 = vmul.f32 %v3170_v18, %v3120_v33  ;;  %v1662_v15 = vmul.f32 %v3255_v57, %v3122_v32  ;;  %v1663_v59 = vmul.f32 %v3258_v58, %v3120_v33 }
 0x4e3   : > { %v2425_v34 = vpack.c.bf16 %v1332_v3, %v1330_v62  ;;  %v1343_v20 = vld [vmem:[#allocation3 + $0x28] sm:$0xff] }
 0x4e4   : > { %1352 = vrot.lane.b32.xlu1 %v3106_v25, %s2570_s22  ;;  %1490 = vrot.lane.b32.xlu0 %v3122_v32, %s2571_s23  ;;  %v1393_v41 = vmul.f32 %v3142_v31, %v1343_v20  ;;  %v1443_v55 = vmul.f32 %v3151_v37, %v1343_v20  ;;  %v1529_v40 = vmul.f32 %v3157_v27, %v1343_v20 }
 0x4e5   : > { %2426 = vmatpush1.bf16.msra.mxu1 %v2425_v34  ;;  %v1579_v61 = vmul.f32 %v3168_v43, %v1343_v20  ;;  %v1665_v26 = vmul.f32 %v3255_v57, %v1343_v20 }
 0x4e8   : > { %1626 = vrot.lane.b32.xlu0 %v3122_v32, %s2572_s24  ;;  %1400 = vrot.lane.b32.xlu1 %v1388_v5, %s2573_s25 }
 0x4ec   : > { %1404 = vrot.lane.b32.xlu0 %v1390_v6, %s2573_s25  ;;  %1450 = vrot.lane.b32.xlu1 %v1438_v12, %s2574_s26 }
 0x4f0   : > { %1454 = vrot.lane.b32.xlu0 %v1440_v38, %s2574_s26  ;;  %1488 = vrot.lane.b32.xlu1 %v3106_v25, %s2571_s23 }
 0x4f4   : > { %1540 = vrot.lane.b32.xlu0 %v1526_v0, %s2575_s27  ;;  %1536 = vrot.lane.b32.xlu1 %v1524_v16, %s2575_s27 }
 0x4f8   : > { %1590 = vrot.lane.b32.xlu0 %v1576_v44, %s2576_s28  ;;  %1586 = vrot.lane.b32.xlu1 %v1574_v42, %s2576_s28 }
 0x4fc   : > { %1356 = vrot.lane.b32.xlu0 %v3120_v33, %s2570_s22  ;;  %1624 = vrot.lane.b32.xlu1 %v3106_v25, %s2572_s24 }
 0x500   : > { %1492 = vrot.lane.b32.xlu0 %v3120_v33, %s2571_s23  ;;  %1402 = vrot.lane.b32.xlu1 %v1389_v23, %s2573_s25 }
 0x504   : > { %1360 = vrot.lane.b32.xlu0 %v1343_v20, %s2570_s22  ;;  %1452 = vrot.lane.b32.xlu1 %v1439_v36, %s2574_s26 }
 0x508   : > { %1496 = vrot.lane.b32.xlu0 %v1343_v20, %s2571_s23  ;;  %1538 = vrot.lane.b32.xlu1 %v1525_v48, %s2575_s27 }
 0x50c   : > { %1632 = vrot.lane.b32.xlu0 %v1343_v20, %s2572_s24  ;;  %1588 = vrot.lane.b32.xlu1 %v1575_v49, %s2576_s28 }
 0x510   : > { %1406 = vrot.lane.b32.xlu0 %v1391_v50, %s2573_s25  ;;  %1358 = vrot.lane.b32.xlu1 %v3111_v2, %s2570_s22 }
 0x514   : > { %1456 = vrot.lane.b32.xlu0 %v1441_v46, %s2574_s26  ;;  %1494 = vrot.lane.b32.xlu1 %v3111_v2, %s2571_s23 }
 0x518   : > { %1542 = vrot.lane.b32.xlu0 %v1527_v53, %s2575_s27  ;;  %1630 = vrot.lane.b32.xlu1 %v3111_v2, %s2572_s24 }
 0x51c   : > { %1592 = vrot.lane.b32.xlu0 %v1577_v51, %s2576_s28  ;;  %1408 = vrot.lane.b32.xlu1 %v1392_v14, %s2573_s25 }
 0x520   : > { %1410 = vrot.lane.b32.xlu0 %v1393_v41, %s2573_s25  ;;  %1458 = vrot.lane.b32.xlu1 %v1442_v28, %s2574_s26 }
 0x524   : > { %1460 = vrot.lane.b32.xlu0 %v1443_v55, %s2574_s26  ;;  %1622 = vrot.lane.b32.xlu1 %v3108_v13, %s2572_s24 }
 0x528   : > { %1546 = vrot.lane.b32.xlu0 %v1529_v40, %s2575_s27  ;;  %1544 = vrot.lane.b32.xlu1 %v1528_v56, %s2575_s27 }
 0x52c   : > { %1596 = vrot.lane.b32.xlu0 %v1579_v61, %s2576_s28  ;;  %1594 = vrot.lane.b32.xlu1 %v1578_v54, %s2576_s28 }
 0x530   : > { %1628 = vrot.lane.b32.xlu0 %v3120_v33, %s2572_s24  ;;  %1674 = vrot.lane.b32.xlu1 %v1661_v8, %s2577_s12 }
 0x534   : > { %1676 = vrot.lane.b32.xlu0 %v1662_v15, %s2577_s12  ;;  %1680 = vrot.lane.b32.xlu1 %v1664_v10, %s2577_s12 }
 0x538   : > { %1682 = vrot.lane.b32.xlu0 %v1665_v26, %s2577_s12  ;;  %1672 = vrot.lane.b32.xlu1 %v1660_v1, %s2577_s12 }
 0x53c   : > { %1678 = vrot.lane.b32.xlu0 %v1663_v59, %s2577_s12  ;;  %1740 = vperm.xlu1 %2519, %v1736_v4  }
 0x540   : > { %1745 = vperm.xlu0 %2520, %v1737_v24  }
 0x54e   : > { %v1351_v25 = vpop.permute.xlu1 %1350 }
 0x552   : > { %v3301_v13 = vpop.permute.xlu1 %1486  ;;  %v1355_v11 = vpop.permute.xlu0 %1354 }
 0x556   : > { %v1353_v2 = vpop.permute.xlu1 %1352  ;;  %v1491_v29 = vpop.permute.xlu0 %1490 }
 0x557   : > { %v1362_v53 = vsel %vm440_vm0, %v1351_v25, %v1353_v2  ;;  %v1363_v51 = vsel %vm440_vm0, %v1353_v2, %v1355_v11 }
 0x55a   : > { %v3303_v30 = vpop.permute.xlu0 %1626  ;;  %v1401_v33 = vpop.permute.xlu1 %1400 }
 0x55e   : > { %v1405_v32 = vpop.permute.xlu0 %1404  ;;  %v1451_v45 = vpop.permute.xlu1 %1450 }
 0x562   : > { %v1455_v62 = vpop.permute.xlu0 %1454  ;;  %v1489_v3 = vpop.permute.xlu1 %1488 }
 0x566   : > { %v1541_v34 = vpop.permute.xlu0 %1540  ;;  %v3305_v5 = vpop.permute.xlu1 %1536 }
 0x56a   : > { %v3307_v6 = vpop.permute.xlu0 %1590  ;;  %v3309_v12 = vpop.permute.xlu1 %1586 }
 0x56e   : > { %v1357_v38 = vpop.permute.xlu0 %1356  ;;  %v3311_v0 = vpop.permute.xlu1 %1624 }
 0x572   : > { %v1493_v16 = vpop.permute.xlu0 %1492  ;;  %v1403_v44 = vpop.permute.xlu1 %1402 }
 0x573   : > { %v1413_v4 = vsel %vm467_vm2, %v1403_v44, %v1405_v32  ;;  %v1412_v22 = vsel %vm467_vm2, %v1401_v33, %v1403_v44 }
 0x576   : > { %v1361_v42 = vpop.permute.xlu0 %1360  ;;  %v1453_v23 = vpop.permute.xlu1 %1452 }
 0x577   : > { %v1462_v32 = vsel %vm491_vm3, %v1451_v45, %v1453_v23 }
 0x57a   : > { %v1497_v36 = vpop.permute.xlu0 %1496  ;;  %v1539_v20 = vpop.permute.xlu1 %1538 }
 0x57e   : > { %v3313_v48 = vpop.permute.xlu0 %1632  ;;  %v3315_v49 = vpop.permute.xlu1 %1588 }
 0x582   : > { %v1407_v50 = vpop.permute.xlu0 %1406  ;;  %v1359_v46 = vpop.permute.xlu1 %1358 }
 0x583   : > { %v1364_v14 = vsel %vm440_vm0, %v1357_v38, %v1359_v46  ;;  %v1365_v41 = vsel %vm440_vm0, %v1359_v46, %v1361_v42  ;;  %v1463_v42 = vsel %vm491_vm3, %v1453_v23, %v1455_v62  ;;  %v1498_v62 = vsel %vm506_vm4, %v3301_v13, %v1489_v3 }
 0x584   : > { %v2427_v28 = vpack.c.bf16 %v1365_v41, %v1363_v51  ;;  %v2429_v55 = vpack.c.bf16 %v1364_v14, %v1362_v53  ;;  %v1499_v51 = vsel %vm506_vm4, %v1489_v3, %v1491_v29  ;;  %v1599_v13 = vsel %vm554_vm6, %v3315_v49, %v3307_v6 }
 0x586   : > { %v1457_v40 = vpop.permute.xlu0 %1456  ;;  %v1495_v56 = vpop.permute.xlu1 %1494  ;;  %2428 = vmatprep.subr.bf16.mxu1 %v2427_v28 }
 0x587   : > { %2430 = vmatpush1.bf16.msra.mxu1 %v2429_v55  ;;  %v1501_v46 = vsel %vm506_vm4, %v1495_v56, %v1497_v36  ;;  %v1500_v44 = vsel %vm506_vm4, %v1493_v16, %v1495_v56  ;;  %v1549_v36 = vsel %vm530_vm5, %v1539_v20, %v1541_v34  ;;  %v1548_v56 = vsel %vm530_vm5, %v3305_v5, %v1539_v20 }
 0x588   : > { %v2439_v28 = vpack.c.bf16 %v1501_v46, %v1499_v51  ;;  %v2441_v45 = vpack.c.bf16 %v1500_v44, %v1498_v62  ;;  %v1635_v5 = vsel %vm565_vm7, %v3311_v0, %v3303_v30 }
 0x58a   : > { %v1543_v61 = vpop.permute.xlu0 %1542  ;;  %v1631_v54 = vpop.permute.xlu1 %1630 }
 0x58e   : > { %v1593_v8 = vpop.permute.xlu0 %1592  ;;  %v1409_v15 = vpop.permute.xlu1 %1408 }
 0x58f   : > { %v1414_v10 = vsel %vm467_vm2, %v1407_v50, %v1409_v15 }
 0x590   : > { %v2433_v25 = vpack.c.bf16 %v1414_v10, %v1412_v22 }
 0x592   : > { %v1411_v26 = vpop.permute.xlu0 %1410  ;;  %v1459_v1 = vpop.permute.xlu1 %1458 }
 0x593   : > { %v1415_v59 = vsel %vm467_vm2, %v1409_v15, %v1411_v26  ;;  %v1464_v11 = vsel %vm491_vm3, %v1457_v40, %v1459_v1 }
 0x594   : > { %v2431_v24 = vpack.c.bf16 %v1415_v59, %v1413_v4  ;;  %v2437_v33 = vpack.c.bf16 %v1464_v11, %v1462_v32  ;;  %v1598_v4 = vsel %vm554_vm6, %v3309_v12, %v3315_v49 }
 0x596   : > { %v1461_v2 = vpop.permute.xlu0 %1460  ;;  %v1623_v38 = vpop.permute.xlu1 %1622  ;;  %2432 = vmatprep.subr.bf16.mxu1 %v2431_v24 }
 0x597   : > { %v1465_v50 = vsel %vm491_vm3, %v1459_v1, %v1461_v2  ;;  %2434 = vmatpush1.bf16.msra.mxu1 %v2433_v25  ;;  %v1637_v1 = vsel %vm565_vm7, %v1631_v54, %v3313_v48  ;;  %v1634_v48 = vsel %vm565_vm7, %v1623_v38, %v3311_v0  ;;  %v1696_v0 = vld [vmem:[%s3589_s5] sm:$0xff]  ;;  %v1699_v38 = vld [vmem:[%s3589_s5 + $0x18] sm:$0xff] }
 0x598   : > { %v2435_v53 = vpack.c.bf16 %v1465_v50, %v1463_v42  ;;  %v2451_v22 = vpack.c.bf16 %v1637_v1, %v1635_v5  ;;  %v1698_v50 = vld [vmem:[%s3589_s5 + $0x10] sm:$0xff] }
 0x59a   : > { %v1547_v14 = vpop.permute.xlu0 %1546  ;;  %v1545_v41 = vpop.permute.xlu1 %1544  ;;  %2436 = vmatprep.subr.bf16.mxu1 %v2435_v53 }
 0x59b   : > { %v1551_v55 = vsel %vm530_vm5, %v1545_v41, %v1547_v14  ;;  %2438 = vmatpush1.bf16.msra.mxu1 %v2437_v33  ;;  %v1550_v23 = vsel %vm530_vm5, %v1543_v61, %v1545_v41 }
 0x59c   : > { %2440 = vmatprep.subr.bf16.mxu1 %v2439_v28  ;;  %v2443_v15 = vpack.c.bf16 %v1551_v55, %v1549_v36  ;;  %v2445_v3 = vpack.c.bf16 %v1550_v23, %v1548_v56 }
 0x59e   : > { %v1597_v29 = vpop.permute.xlu0 %1596  ;;  %v1595_v40 = vpop.permute.xlu1 %1594 }
 0x59f   : > { %v1601_v16 = vsel %vm554_vm6, %v1595_v40, %v1597_v29  ;;  %2442 = vmatpush1.bf16.msra.mxu1 %v2441_v45  ;;  %v1600_v34 = vsel %vm554_vm6, %v1593_v8, %v1595_v40 }
 0x5a0   : > { %2444 = vmatprep.subr.bf16.mxu1 %v2443_v15  ;;  %v2447_v61 = vpack.c.bf16 %v1601_v16, %v1599_v13  ;;  %v2449_v6 = vpack.c.bf16 %v1600_v34, %v1598_v4 }
 0x5a2   : > { %v1629_v10 = vpop.permute.xlu0 %1628  ;;  %v1675_v26 = vpop.permute.xlu1 %1674 }
 0x5a3   : > { %2446 = vmatpush1.bf16.msra.mxu1 %v2445_v3  ;;  %v1636_v20 = vsel %vm565_vm7, %v1629_v10, %v1631_v54 }
 0x5a4   : > { %2448 = vmatprep.subr.bf16.mxu1 %v2447_v61  ;;  %v2453_v24 = vpack.c.bf16 %v1636_v20, %v1634_v48 }
 0x5a6   : > { %v1677_v8 = vpop.permute.xlu0 %1676  ;;  %v1681_v59 = vpop.permute.xlu1 %1680 }
 0x5a7   : > { %2450 = vmatpush1.bf16.msra.mxu1 %v2449_v6  ;;  %v1685_v12 = vsel %vm588_vm1, %v1675_v26, %v1677_v8 }
 0x5a8   : > { %2452 = vmatprep.subr.bf16.mxu1 %v2451_v22 }
 0x5aa   : > { %v1683_v25 = vpop.permute.xlu0 %1682  ;;  %v1673_v11 = vpop.permute.xlu1 %1672 }
 0x5ab   : > { %v1687_v49 = vsel %vm588_vm1, %v1681_v59, %v1683_v25  ;;  %2454 = vmatpush1.bf16.msra.mxu1 %v2453_v24  ;;  %v1684_v54 = vsel %vm588_vm1, %v1673_v11, %v1675_v26 }
 0x5ac   : > { %v2455_v30 = vpack.c.bf16 %v1687_v49, %v1685_v12 }
 0x5ae   : > { %v1679_v2 = vpop.permute.xlu0 %1678  ;;  %2456 = vmatprep.subr.bf16.mxu1 %v2455_v30 }
 0x5af   : > { %v1686_v42 = vsel %vm588_vm1, %v1679_v2, %v1681_v59 }
 0x5b0   : > { %v2457_v46 = vpack.c.bf16 %v1686_v42, %v1684_v54 }
 0x5b2   : > { %2458 = vmatpush1.bf16.msra.mxu1 %v2457_v46 }
 0x5b5   : > { %1819 = vmatmul.mubr.f32.vlgmr.msra.gmra.mrb[0].mxu1 %v1696_v0 }
 0x5b6   : > { %2400 = vmatprep.mubr.msk.f32.mxu1 %vm474_vm12, %v1699_v38 }
 0x5b9   : > { %1825 = vmatmul.mubr.f32.gmra.mrb[2].mxu1 %v1698_v50 }
 0x5bb   : > { %v1741_v32 = vpop.permute.xlu1 %1740 }
 0x5bf   : > { %v1746_v41 = vpop.permute.xlu0 %1745 }
 0x688   : > { %v1820_v53 = vpop.f32.mrb[0].mxu1 }
 0x689   : > { %v1821_v51 = vadd.f32 %v1820_v53, %v1741_v32  ;;  %v1822_v33 = vpop.f32.mrb[1].mxu1 }
 0x68a   : > { %v1823_v44 = vadd.f32 %v1822_v33, %v1741_v32 }
 0x68b   : > { %v1831_v14 = vmax.f32 %v1821_v51, 0.0 }
 0x68c   : > { %v1832_v28 = vmax.f32 %v1823_v44, 0.0  ;;  %v1826_v55 = vpop.f32.mrb[2].mxu1 }
 0x68d   : > { %v1827_v62 = vadd.f32 %v1826_v55, %v1746_v41  ;;  %v1828_v36 = vpop.f32.mrb[3].mxu1  ;;  %1839 = vrot.lane.b32.xlu1 %v1831_v14, %s2564_s16 }
 0x68e   : > { %v1829_v45 = vadd.f32 %v1828_v36, %v1746_v41  ;;  %1841 = vrot.lane.b32.xlu0 %v1832_v28, %s2564_s16 }
 0x68f   : > { %v1833_v23 = vmax.f32 %v1827_v62, 0.0 }
 0x690   : > { %v1834_v29 = vmax.f32 %v1829_v45, 0.0 }
 0x691   : > { %1843 = vrot.lane.b32.xlu1 %v1833_v23, %s2564_s16 }
 0x692   : > { %1845 = vrot.lane.b32.xlu0 %v1834_v29, %s2564_s16 }
 0x6ff   : > { %v1840_v40 = vpop.permute.xlu1 %1839 }
 0x700   : > { %1855 = vst.msk [vmem:[#allocation3] sm:$0xff] %vm1319_vm10, %v1840_v40  ;;  %v1842_v15 = vpop.permute.xlu0 %1841 }
 0x701   : > { %v3375_v16 = vsel %vm410_vm8, %v1840_v40, %v1842_v15  ;;  %1857 = vst.msk [vmem:[#allocation3 + $0x10] sm:$0xff] %vm410_vm8, %v1842_v15 }
 0x702   : > { %v1866_v56 = vmul.f32 %v2656_v9, %v3375_v16  ;;  %v1916_v12 = vmul.f32 %v3375_v16, %v3183_v52  ;;  %v1958_v11 = vmul.f32 %v3375_v16, %v3197_v39  ;;  %v2036_v30 = vmul.f32 %v3375_v16, %v3204_v47 }
 0x703   : > { %v1844_v13 = vpop.permute.xlu1 %1843  ;;  %v2078_v2 = vmul.f32 %v3375_v16, %v3215_v19 }
 0x704   : > { %1858 = vst.msk [vmem:[#allocation3 + $0x18] sm:$0xff] %vm1319_vm10, %v1844_v13  ;;  %v1846_v3 = vpop.permute.xlu0 %1845  ;;  %1870 = vst [vmem:[#allocation4 + $0x8] sm:$0xff] %v1866_v56 }
 0x705   : > { %v3382_v34 = vsel %vm410_vm8, %v1844_v13, %v1846_v3  ;;  %1860 = vst.msk [vmem:[#allocation3 + $0x28] sm:$0xff] %vm410_vm8, %v1846_v3 }
 0x706   : > { %v1868_v10 = vmul.f32 %v2656_v9, %v3382_v34 }
 0x707   : > { %v3387_v26 = vld [vmem:[#allocation3] sm:$0xff] }
 0x708   : > { %1885 = vrot.lane.b32.xlu1 %v3387_v26, %s2570_s22  ;;  %v3391_v61 = vld [vmem:[#allocation3 + $0x10] sm:$0xff]  ;;  %1872 = vst [vmem:[#allocation4 + $0x18] sm:$0xff] %v1868_v10  ;;  %v2459_v1 = vpack.c.bf16 %v1868_v10, %v1866_v56  ;;  %v1865_v4 = vmul.f32 %v2652_v7, %v3387_v26  ;;  %v1915_v20 = vmul.f32 %v3132_v60, %v3387_v26 }
 0x709   : > { %1889 = vrot.lane.b32.xlu0 %v3391_v61, %s2570_s22  ;;  %v1917_v8 = vmul.f32 %v3142_v31, %v3391_v61  ;;  %v1959_v59 = vmul.f32 %v3151_v37, %v3391_v61  ;;  %v2037_v22 = vmul.f32 %v3157_v27, %v3391_v61  ;;  %v2035_v48 = vmul.f32 %v3159_v17, %v3387_v26 }
 0x70a   : > { %2460 = vmatprep.subr.bf16.mxu0 %v2459_v1  ;;  %1869 = vst [vmem:[#allocation4] sm:$0xff] %v1865_v4  ;;  %v2079_v24 = vmul.f32 %v3168_v43, %v3391_v61  ;;  %v2077_v25 = vmul.f32 %v3170_v18, %v3387_v26  ;;  %v2155_v32 = vmul.f32 %v3258_v58, %v3387_v26 }
 0x70b   : > { %v3397_v5 = vld [vmem:[#allocation3 + $0x18] sm:$0xff] }
 0x70c   : > { %2005 = vrot.lane.b32.xlu1 %v3387_v26, %s2571_s23  ;;  %v1867_v9 = vmul.f32 %v2652_v7, %v3397_v5  ;;  %v1957_v7 = vmul.f32 %v3140_v35, %v3387_v26  ;;  %v1878_v49 = vld [vmem:[#allocation3 + $0x28] sm:$0xff]  ;;  %v1918_v54 = vmul.f32 %v3132_v60, %v3397_v5  ;;  %v1960_v42 = vmul.f32 %v3140_v35, %v3397_v5 }
 0x70d   : > { %2009 = vrot.lane.b32.xlu0 %v3391_v61, %s2571_s23  ;;  %v2038_v46 = vmul.f32 %v3159_v17, %v3397_v5  ;;  %v2080_v60 = vmul.f32 %v3170_v18, %v3397_v5  ;;  %v1919_v35 = vmul.f32 %v3382_v34, %v3183_v52  ;;  %v1920_v0 = vmul.f32 %v3142_v31, %v1878_v49 }
 0x70e   : > { %1871 = vst [vmem:[#allocation4 + $0x10] sm:$0xff] %v1867_v9  ;;  %v2461_v6 = vpack.c.bf16 %v1867_v9, %v1865_v4  ;;  %v1961_v17 = vmul.f32 %v3382_v34, %v3197_v39  ;;  %v1962_v38 = vmul.f32 %v3151_v37, %v1878_v49  ;;  %v2040_v18 = vmul.f32 %v3157_v27, %v1878_v49 }
 0x70f   : > { %v2039_v31 = vmul.f32 %v3382_v34, %v3204_v47  ;;  %v2082_v52 = vmul.f32 %v3168_v43, %v1878_v49  ;;  %v2081_v37 = vmul.f32 %v3382_v34, %v3215_v19  ;;  %v2156_v27 = vmul.f32 %v3375_v16, %v3268_v63  ;;  %v3505_v43 = vld [vmem:[%s3591_s7] sm:$0xff] }
 0x710   : > { %1887 = vrot.lane.b32.xlu1 %v3375_v16, %s2570_s22  ;;  %2462 = vmatpush1.bf16.msra.mxu0 %v2461_v6  ;;  %v2157_v39 = vmul.f32 %v3255_v57, %v3391_v61  ;;  %v2235_v47 = vcombine.high %v3505_v43, %v3505_v43  ;;  %v2159_v19 = vmul.f32 %v3382_v34, %v3268_v63  ;;  %v2228_v63 = vld [vmem:[%s3592_s8] sm:$0xf] }
 0x711   : > { %2129 = vrot.lane.b32.xlu0 %v3391_v61, %s2572_s24  ;;  %v2160_v50 = vmul.f32 %v3255_v57, %v1878_v49  ;;  %v2158_v53 = vmul.f32 %v3258_v58, %v3397_v5 }
 0x712   : > { %2401 = vmatprep.mubr.msk.f32.mxu0 %vm474_vm12, %v2235_v47 }
 0x714   : > { %1927 = vrot.lane.b32.xlu1 %v1915_v20, %s2573_s25 }
 0x715   : > { %1931 = vrot.lane.b32.xlu0 %v1917_v8, %s2573_s25 }
 0x718   : > { %1969 = vrot.lane.b32.xlu1 %v1957_v7, %s2574_s26 }
 0x719   : > { %1973 = vrot.lane.b32.xlu0 %v1959_v59, %s2574_s26 }
 0x71c   : > { %2007 = vrot.lane.b32.xlu1 %v3375_v16, %s2571_s23 }
 0x71d   : > { %2051 = vrot.lane.b32.xlu0 %v2037_v22, %s2575_s27 }
 0x720   : > { %2047 = vrot.lane.b32.xlu1 %v2035_v48, %s2575_s27 }
 0x721   : > { %2093 = vrot.lane.b32.xlu0 %v2079_v24, %s2576_s28 }
 0x724   : > { %2089 = vrot.lane.b32.xlu1 %v2077_v25, %s2576_s28 }
 0x725   : > { %1891 = vrot.lane.b32.xlu0 %v3397_v5, %s2570_s22 }
 0x728   : > { %2127 = vrot.lane.b32.xlu1 %v3375_v16, %s2572_s24 }
 0x729   : > { %2011 = vrot.lane.b32.xlu0 %v3397_v5, %s2571_s23 }
 0x72c   : > { %1929 = vrot.lane.b32.xlu1 %v1916_v12, %s2573_s25 }
 0x72d   : > { %1895 = vrot.lane.b32.xlu0 %v1878_v49, %s2570_s22 }
 0x730   : > { %1971 = vrot.lane.b32.xlu1 %v1958_v11, %s2574_s26 }
 0x731   : > { %2015 = vrot.lane.b32.xlu0 %v1878_v49, %s2571_s23 }
 0x734   : > { %2049 = vrot.lane.b32.xlu1 %v2036_v30, %s2575_s27 }
 0x735   : > { %2135 = vrot.lane.b32.xlu0 %v1878_v49, %s2572_s24 }
 0x738   : > { %2091 = vrot.lane.b32.xlu1 %v2078_v2, %s2576_s28 }
 0x739   : > { %1933 = vrot.lane.b32.xlu0 %v1918_v54, %s2573_s25 }
 0x73c   : > { %1893 = vrot.lane.b32.xlu1 %v3382_v34, %s2570_s22 }
 0x73d   : > { %1975 = vrot.lane.b32.xlu0 %v1960_v42, %s2574_s26 }
 0x740   : > { %2013 = vrot.lane.b32.xlu1 %v3382_v34, %s2571_s23 }
 0x741   : > { %2053 = vrot.lane.b32.xlu0 %v2038_v46, %s2575_s27 }
 0x744   : > { %2133 = vrot.lane.b32.xlu1 %v3382_v34, %s2572_s24 }
 0x745   : > { %2095 = vrot.lane.b32.xlu0 %v2080_v60, %s2576_s28 }
 0x748   : > { %1935 = vrot.lane.b32.xlu1 %v1919_v35, %s2573_s25 }
 0x749   : > { %1937 = vrot.lane.b32.xlu0 %v1920_v0, %s2573_s25 }
 0x74c   : > { %1977 = vrot.lane.b32.xlu1 %v1961_v17, %s2574_s26 }
 0x74d   : > { %1979 = vrot.lane.b32.xlu0 %v1962_v38, %s2574_s26 }
 0x750   : > { %2125 = vrot.lane.b32.xlu1 %v3387_v26, %s2572_s24 }
 0x751   : > { %2057 = vrot.lane.b32.xlu0 %v2040_v18, %s2575_s27 }
 0x754   : > { %2055 = vrot.lane.b32.xlu1 %v2039_v31, %s2575_s27  ;;  %s353_s27 = scalar_lea.vmem %s3593_s9, %s2640_s0 }
 0x755   : > { %2099 = vrot.lane.b32.xlu0 %v2082_v52, %s2576_s28 }
 0x758   : > { %2097 = vrot.lane.b32.xlu1 %v2081_v37, %s2576_s28 }
 0x759   : > { %2131 = vrot.lane.b32.xlu0 %v3397_v5, %s2572_s24 }
 0x75c   : > { %2169 = vrot.lane.b32.xlu1 %v2156_v27, %s2577_s12 }
 0x75d   : > { %2171 = vrot.lane.b32.xlu0 %v2157_v39, %s2577_s12 }
 0x760   : > { %2175 = vrot.lane.b32.xlu1 %v2159_v19, %s2577_s12 }
 0x761   : > { %2177 = vrot.lane.b32.xlu0 %v2160_v50, %s2577_s12 }
 0x764   : > { %2167 = vrot.lane.b32.xlu1 %v2155_v32, %s2577_s12 }
 0x765   : > { %2173 = vrot.lane.b32.xlu0 %v2158_v53, %s2577_s12 }
 0x768   : > { %2231 = vperm.xlu1 %2519, %v2228_v63  }
 0x77a   : > { %v1886_v57 = vpop.permute.xlu1 %1885 }
 0x77b   : > { %v1890_v51 = vpop.permute.xlu0 %1889 }
 0x77e   : > { %v2006_v33 = vpop.permute.xlu1 %2005 }
 0x77f   : > { %v2010_v44 = vpop.permute.xlu0 %2009 }
 0x782   : > { %v1888_v14 = vpop.permute.xlu1 %1887 }
 0x783   : > { %v1897_v41 = vsel %vm440_vm0, %v1886_v57, %v1888_v14  ;;  %v1898_v28 = vsel %vm440_vm0, %v1888_v14, %v1890_v51  ;;  %v2130_v55 = vpop.permute.xlu0 %2129 }
 0x784   : > { %1905 = vst [vmem:[#allocation4 + $0x20] sm:$0xff] %v1897_v41  ;;  %1906 = vst [vmem:[#allocation4 + $0x28] sm:$0xff] %v1898_v28 }
 0x786   : > { %v1928_v58 = vpop.permute.xlu1 %1927 }
 0x787   : > { %v1932_v62 = vpop.permute.xlu0 %1931 }
 0x78a   : > { %v1970_v36 = vpop.permute.xlu1 %1969 }
 0x78b   : > { %v1974_v45 = vpop.permute.xlu0 %1973 }
 0x78e   : > { %v2008_v23 = vpop.permute.xlu1 %2007 }
 0x78f   : > { %v3529_v29 = vsel %vm506_vm4, %v2006_v33, %v2008_v23  ;;  %v3532_v40 = vsel %vm506_vm4, %v2008_v23, %v2010_v44  ;;  %v2052_v15 = vpop.permute.xlu0 %2051 }
 0x790   : > { %2025 = vst [vmem:[#allocation4 + $0x80] sm:$0xff] %v3529_v29  ;;  %2026 = vst [vmem:[#allocation4 + $0x88] sm:$0xff] %v3532_v40 }
 0x792   : > { %v2048_v16 = vpop.permute.xlu1 %2047 }
 0x793   : > { %v2094_v56 = vpop.permute.xlu0 %2093 }
 0x796   : > { %v2090_v13 = vpop.permute.xlu1 %2089 }
 0x797   : > { %v1892_v3 = vpop.permute.xlu0 %1891 }
 0x79a   : > { %v2128_v34 = vpop.permute.xlu1 %2127 }
 0x79b   : > { %v3537_v10 = vsel %vm565_vm7, %v2128_v34, %v2130_v55  ;;  %v2012_v26 = vpop.permute.xlu0 %2011 }
 0x79e   : > { %v1930_v61 = vpop.permute.xlu1 %1929 }
 0x79f   : > { %v1939_v1 = vsel %vm467_vm2, %v1928_v58, %v1930_v61  ;;  %v1940_v4 = vsel %vm467_vm2, %v1930_v61, %v1932_v62  ;;  %v1896_v5 = vpop.permute.xlu0 %1895 }
 0x7a0   : > { %1947 = vst [vmem:[#allocation4 + $0x40] sm:$0xff] %v1939_v1  ;;  %1948 = vst [vmem:[#allocation4 + $0x48] sm:$0xff] %v1940_v4 }
 0x7a2   : > { %v1972_v9 = vpop.permute.xlu1 %1971 }
 0x7a3   : > { %v1981_v6 = vsel %vm491_vm3, %v1970_v36, %v1972_v9  ;;  %v1982_v20 = vsel %vm491_vm3, %v1972_v9, %v1974_v45  ;;  %v2016_v8 = vpop.permute.xlu0 %2015 }
 0x7a4   : > { %1989 = vst [vmem:[#allocation4 + $0x60] sm:$0xff] %v1981_v6  ;;  %1990 = vst [vmem:[#allocation4 + $0x68] sm:$0xff] %v1982_v20 }
 0x7a6   : > { %v2050_v7 = vpop.permute.xlu1 %2049 }
 0x7a7   : > { %v3544_v59 = vsel %vm530_vm5, %v2048_v16, %v2050_v7  ;;  %v2060_v22 = vsel %vm530_vm5, %v2050_v7, %v2052_v15  ;;  %v2136_v48 = vpop.permute.xlu0 %2135 }
 0x7aa   : > { %v2092_v24 = vpop.permute.xlu1 %2091 }
 0x7ab   : > { %v3548_v25 = vsel %vm554_vm6, %v2090_v13, %v2092_v24  ;;  %v2102_v12 = vsel %vm554_vm6, %v2092_v24, %v2094_v56  ;;  %v1934_v49 = vpop.permute.xlu0 %1933 }
 0x7ae   : > { %v1894_v11 = vpop.permute.xlu1 %1893 }
 0x7af   : > { %v1899_v30 = vsel %vm440_vm0, %v1892_v3, %v1894_v11  ;;  %v1900_v2 = vsel %vm440_vm0, %v1894_v11, %v1896_v5  ;;  %v1976_v54 = vpop.permute.xlu0 %1975 }
 0x7b0   : > { %1907 = vst [vmem:[#allocation4 + $0x30] sm:$0xff] %v1899_v30  ;;  %1908 = vst [vmem:[#allocation4 + $0x38] sm:$0xff] %v1900_v2  ;;  %v2463_v42 = vpack.c.bf16 %v1900_v2, %v1898_v28  ;;  %v2465_v46 = vpack.c.bf16 %v1899_v30, %v1897_v41 }
 0x7b2   : > { %v2014_v60 = vpop.permute.xlu1 %2013  ;;  %2464 = vmatprep.subr.bf16.mxu0 %v2463_v42 }
 0x7b3   : > { %v2019_v35 = vsel %vm506_vm4, %v2012_v26, %v2014_v60  ;;  %v2020_v0 = vsel %vm506_vm4, %v2014_v60, %v2016_v8  ;;  %v2054_v17 = vpop.permute.xlu0 %2053  ;;  %2466 = vmatpush1.bf16.msra.mxu0 %v2465_v46 }
 0x7b4   : > { %v2475_v41 = vpack.c.bf16 %v2020_v0, %v3532_v40  ;;  %v2477_v55 = vpack.c.bf16 %v2019_v35, %v3529_v29 }
 0x7b6   : > { %v2134_v38 = vpop.permute.xlu1 %2133 }
 0x7b7   : > { %v2140_v18 = vsel %vm565_vm7, %v2134_v38, %v2136_v48  ;;  %v2096_v31 = vpop.permute.xlu0 %2095 }
 0x7b8   : > { %v2487_v61 = vpack.c.bf16 %v2140_v18, %v3537_v10 }
 0x7ba   : > { %v1936_v52 = vpop.permute.xlu1 %1935 }
 0x7bb   : > { %v1941_v37 = vsel %vm467_vm2, %v1934_v49, %v1936_v52  ;;  %v1938_v27 = vpop.permute.xlu0 %1937 }
 0x7bc   : > { %1949 = vst [vmem:[#allocation4 + $0x50] sm:$0xff] %v1941_v37  ;;  %v1942_v39 = vsel %vm467_vm2, %v1936_v52, %v1938_v27  ;;  %v2469_v50 = vpack.c.bf16 %v1941_v37, %v1939_v1 }
 0x7bd   : > { %1950 = vst [vmem:[#allocation4 + $0x58] sm:$0xff] %v1942_v39  ;;  %v2467_v47 = vpack.c.bf16 %v1942_v39, %v1940_v4 }
 0x7be   : > { %v1978_v19 = vpop.permute.xlu1 %1977 }
 0x7bf   : > { %v1983_v32 = vsel %vm491_vm3, %v1976_v54, %v1978_v19  ;;  %v1980_v53 = vpop.permute.xlu0 %1979  ;;  %2468 = vmatprep.subr.bf16.mxu0 %v2467_v47 }
 0x7c0   : > { %1991 = vst [vmem:[#allocation4 + $0x70] sm:$0xff] %v1983_v32  ;;  %v1984_v63 = vsel %vm491_vm3, %v1978_v19, %v1980_v53  ;;  %2470 = vmatpush1.bf16.msra.mxu0 %v2469_v50  ;;  %v2473_v33 = vpack.c.bf16 %v1983_v32, %v1981_v6 }
 0x7c1   : > { %1992 = vst [vmem:[#allocation4 + $0x78] sm:$0xff] %v1984_v63  ;;  %v2471_v57 = vpack.c.bf16 %v1984_v63, %v1982_v20 }
 0x7c2   : > { %v2126_v51 = vpop.permute.xlu1 %2125 }
 0x7c3   : > { %v2137_v44 = vsel %vm565_vm7, %v2126_v51, %v2128_v34  ;;  %v2058_v14 = vpop.permute.xlu0 %2057  ;;  %2472 = vmatprep.subr.bf16.mxu0 %v2471_v57 }
 0x7c4   : > { %2474 = vmatpush1.bf16.msra.mxu0 %v2473_v33 }
 0x7c5   : > { %2476 = vmatprep.subr.bf16.mxu0 %v2475_v41 }
 0x7c6   : > { %v2056_v28 = vpop.permute.xlu1 %2055 }
 0x7c7   : > { %v2061_v58 = vsel %vm530_vm5, %v2054_v17, %v2056_v28  ;;  %v2062_v62 = vsel %vm530_vm5, %v2056_v28, %v2058_v14  ;;  %v2100_v36 = vpop.permute.xlu0 %2099 }
 0x7c8   : > { %2478 = vmatpush1.bf16.msra.mxu0 %v2477_v55  ;;  %v2479_v45 = vpack.c.bf16 %v2062_v62, %v2060_v22  ;;  %v2481_v15 = vpack.c.bf16 %v2061_v58, %v3544_v59 }
 0x7ca   : > { %v2098_v23 = vpop.permute.xlu1 %2097  ;;  %2480 = vmatprep.subr.bf16.mxu0 %v2479_v45 }
 0x7cb   : > { %v2103_v16 = vsel %vm554_vm6, %v2096_v31, %v2098_v23  ;;  %v2104_v40 = vsel %vm554_vm6, %v2098_v23, %v2100_v36  ;;  %v2132_v56 = vpop.permute.xlu0 %2131 }
 0x7cc   : > { %v2139_v13 = vsel %vm565_vm7, %v2132_v56, %v2134_v38  ;;  %2482 = vmatpush1.bf16.msra.mxu0 %v2481_v15  ;;  %v2483_v29 = vpack.c.bf16 %v2104_v40, %v2102_v12  ;;  %v2485_v34 = vpack.c.bf16 %v2103_v16, %v3548_v25 }
 0x7cd   : > { %v2489_v5 = vpack.c.bf16 %v2139_v13, %v2137_v44 }
 0x7ce   : > { %v2170_v3 = vpop.permute.xlu1 %2169  ;;  %2484 = vmatprep.subr.bf16.mxu0 %v2483_v29 }
 0x7cf   : > { %v2172_v26 = vpop.permute.xlu0 %2171 }
 0x7d0   : > { %v2180_v1 = vsel %vm588_vm1, %v2170_v3, %v2172_v26  ;;  %2486 = vmatpush1.bf16.msra.mxu0 %v2485_v34 }
 0x7d1   : > { %2488 = vmatprep.subr.bf16.mxu0 %v2487_v61 }
 0x7d2   : > { %v2176_v4 = vpop.permute.xlu1 %2175 }
 0x7d3   : > { %v2178_v9 = vpop.permute.xlu0 %2177 }
 0x7d4   : > { %v2182_v6 = vsel %vm588_vm1, %v2176_v4, %v2178_v9  ;;  %2490 = vmatpush1.bf16.msra.mxu0 %v2489_v5 }
 0x7d5   : > { %v2491_v20 = vpack.c.bf16 %v2182_v6, %v2180_v1 }
 0x7d6   : > { %v2168_v8 = vpop.permute.xlu1 %2167 }
 0x7d7   : > { %v2179_v7 = vsel %vm588_vm1, %v2168_v8, %v2170_v3  ;;  %v2174_v59 = vpop.permute.xlu0 %2173  ;;  %2492 = vmatprep.subr.bf16.mxu0 %v2491_v20 }
 0x7d8   : > { %v2181_v22 = vsel %vm588_vm1, %v2174_v59, %v2176_v4 }
 0x7d9   : > { %v2493_v10 = vpack.c.bf16 %v2181_v22, %v2179_v7 }
 0x7db   : > { %2494 = vmatpush1.bf16.msra.mxu0 %v2493_v10 }
 0x7de   : > { %2303 = vmatmul.mubr.f32.vlgmr.msra.gmra.mrb[4].mxu0 %v3505_v43 }
 0x7e7   : > { %v2232_v48 = vpop.permute.xlu1 %2231 }
 0x8b1   : > { %v2304_v24 = vpop.f32.mrb[4].mxu0 }
 0x8b2   : > { %v2305_v25 = vadd.f32 %v2304_v24, %v2232_v48  ;;  %v2306_v12 = vpop.f32.mrb[5].mxu0 }
 0x8b3   : > { %v2307_v49 = vadd.f32 %v2306_v12, %v2232_v48 }
 0x8b5   : > { %v2311_v11 = vcombine.low %v2305_v25, %v2307_v49 }
 0x8b7   : > { %v2313_v30 = vsub.f32 %v2956_v21, %v2311_v11 }
 0x8b9   : > { %2314 = vst [vmem:[%s353_s27] sm:$0xff] %v2313_v30 }
 0x8ba PF: > { %s20_s11 = sadd.s32 1, %s2561_s11  }
 0x8bb   : > { %p17_p4 = scmp.ge.s32.totalorder %s20_s11, 4  }
 0x8bd   :  { %19 = sbr.rel (!%p17_p4) target bundleno = 2 (0x2), region = 89 }

</bundles_post_ra>
